<compile_context>
chip_gen: v7x
topology: tpu7x:2x2x1
jax: 0.10.0
libtpu: 0.0.40
codegen_flags: <defaults>
</compile_context>

<pallas_src>
import functools

import jax
import jax.numpy as jnp
from jax.experimental import pallas as pl
from jax.experimental.pallas import tpu as pltpu

LRELU_SLOPE = 0.2
BN_EPS = 1e-5


# ---------------------------------------------------------------------------
# In-kernel helpers
# ---------------------------------------------------------------------------
def _lrelu(x):
    return jnp.where(x >= 0.0, x, LRELU_SLOPE * x)


def _masked_shifts(y, m_ref, shifts):
    """All 9 zero-padded taps of a flattened (C, P) image.

    y:      (C, P) f32, spatial row-major on lanes.
    m_ref:  (9, 1, P) validity masks (1.0 inside the image after the shift).
    shifts: static tuple of flat shifts s = dy*W + dx, tap t = (dy+1)*3+(dx+1).
    returns list of 9 (C, P) f32 values, shifted[t][c, j] = y[c, j + s_t] or 0.
    """
    P = y.shape[1]
    out = []
    for t, s in enumerate(shifts):
        v = pltpu.roll(y, (-s) % P, 1) if s else y
        out.append(v * m_ref[t])
    return out


def _sum_sumsq(a):
    return jnp.concatenate(
        [jnp.sum(a, axis=1, keepdims=True),
         jnp.sum(a * a, axis=1, keepdims=True)], axis=1)        # (C, 2)


# ---------------------------------------------------------------------------
# Kernels
# ---------------------------------------------------------------------------
def _conv13_stats_kernel(x_ref, m_ref, w1_ref, w3_ref,
                         c1_ref, c3_ref, s1_ref, s3_ref, *, shifts):
    """Fused conv1 + conv3 (shared input) + per-image BN1/BN3 partial stats."""
    x = x_ref[0].astype(jnp.float32)                            # (Cin, P)
    # Stack the 9 taps into the contraction dim -> one K=9*Cin matmul per conv.
    xs = jnp.concatenate(_masked_shifts(x, m_ref, shifts),
                         axis=0).astype(jnp.bfloat16)           # (9*Cin, P)
    a1 = jnp.dot(w1_ref[...], xs, preferred_element_type=jnp.float32)
    a3 = jnp.dot(w3_ref[...], xs, preferred_element_type=jnp.float32)
    c1_ref[0] = a1.astype(c1_ref.dtype)
    c3_ref[0] = a3.astype(c3_ref.dtype)
    s1_ref[0] = _sum_sumsq(a1)
    s3_ref[0] = _sum_sumsq(a3)


def _bn_up_conv_stats_kernel(c1_ref, a1_ref, m_ref, w_ref, o_ref, s_ref,
                             *, shifts):
    """Fused BN1-apply + LeakyReLU + [2x-up -> conv2] (parity form) + BN2 stats.

    conv2 applied to the nearest-2x upsample is computed without materializing
    the upsample: output parity (a, b) is a 2x2-tap conv on the original grid
    with host-folded weights w_ref[p], p = a*2 + b.
    """
    cout = w_ref.shape[1]
    y = c1_ref[0].astype(jnp.float32) * a1_ref[:, 0:1] + a1_ref[:, 1:2]
    y = _lrelu(y)
    sh = _masked_shifts(y, m_ref, shifts)                       # 9 x (Cin, P)
    ssum = jnp.zeros((cout, 1), jnp.float32)
    ssq = jnp.zeros((cout, 1), jnp.float32)
    for a in (0, 1):
        for b in (0, 1):
            p = a * 2 + b
            # taps for parity (a,b): row offsets {a-1, a}, col offsets {b-1, b}
            taps = [sh[(a + ku) * 3 + (b + kv)]
                    for ku in (0, 1) for kv in (0, 1)]
            xs = jnp.concatenate(taps, axis=0).astype(jnp.bfloat16)  # (4Cin, P)
            z = jnp.dot(w_ref[p], xs, preferred_element_type=jnp.float32)
            o_ref[0, p] = z.astype(o_ref.dtype)
            ssum = ssum + jnp.sum(z, axis=1, keepdims=True)
            ssq = ssq + jnp.sum(z * z, axis=1, keepdims=True)
    s_ref[0] = jnp.concatenate([ssum, ssq], axis=1)


def _bn_lrelu_shuffle_add_kernel(c2_ref, a2_ref, c3_ref, a3_ref, o_ref, *, act):
    """Fused BN2-apply (+opt lrelu) + BN3-apply + lrelu(s) + parity-bcast add."""
    y3 = c3_ref[0].astype(jnp.float32) * a3_ref[:, 0:1] + a3_ref[:, 1:2]
    y3 = _lrelu(y3)            # LeakyReLU inside conv3_block
    if act:
        y3 = _lrelu(y3)        # the extra self.lrelu on the branch output
    for p in range(4):
        y2 = c2_ref[0, p].astype(jnp.float32) * a2_ref[:, 0:1] + a2_ref[:, 1:2]
        if act:
            y2 = _lrelu(y2)
        # nearest-2x upsample of y3 == same y3 added to every parity slab
        o_ref[0, p] = (y2 + y3).astype(o_ref.dtype)


# ---------------------------------------------------------------------------
# pallas_call wrappers
# ---------------------------------------------------------------------------
_VMEM_LIMIT = 32 * 1024 * 1024  # safe on v5e/v6e/v7x; blocks here are tiny


def _shift_tuple(W):
    return tuple(dy * W + dx for dy in (-1, 0, 1) for dx in (-1, 0, 1))


def conv13_with_stats(x, masks, w1s, w3s, *, W, out_dtype):
    N, cin, P = x.shape
    c1, c3 = w1s.shape[0], w3s.shape[0]
    kern = functools.partial(_conv13_stats_kernel, shifts=_shift_tuple(W))
    return pl.pallas_call(
        kern,
        grid=(N,),
        in_specs=[
            pl.BlockSpec((1, cin, P), lambda n: (n, 0, 0)),
            pl.BlockSpec((9, 1, P), lambda n: (0, 0, 0)),
            pl.BlockSpec((c1, 9 * cin), lambda n: (0, 0)),
            pl.BlockSpec((c3, 9 * cin), lambda n: (0, 0)),
        ],
        out_specs=[
            pl.BlockSpec((1, c1, P), lambda n: (n, 0, 0)),
            pl.BlockSpec((1, c3, P), lambda n: (n, 0, 0)),
            pl.BlockSpec((1, c1, 2), lambda n: (n, 0, 0)),
            pl.BlockSpec((1, c3, 2), lambda n: (n, 0, 0)),
        ],
        out_shape=(
            jax.ShapeDtypeStruct((N, c1, P), out_dtype),
            jax.ShapeDtypeStruct((N, c3, P), out_dtype),
            jax.ShapeDtypeStruct((N, c1, 2), jnp.float32),
            jax.ShapeDtypeStruct((N, c3, 2), jnp.float32),
        ),
        compiler_params=pltpu.CompilerParams(
            dimension_semantics=("parallel",),
            vmem_limit_bytes=_VMEM_LIMIT),
    )(x, masks, w1s, w3s)


def bn_up_conv_with_stats(c1_pre, aff1, masks, w2p, *, W, out_dtype):
    N, cin, P = c1_pre.shape
    cout = w2p.shape[1]
    kern = functools.partial(_bn_up_conv_stats_kernel, shifts=_shift_tuple(W))
    return pl.pallas_call(
        kern,
        grid=(N,),
        in_specs=[
            pl.BlockSpec((1, cin, P), lambda n: (n, 0, 0)),
            pl.BlockSpec((cin, 2), lambda n: (0, 0)),
            pl.BlockSpec((9, 1, P), lambda n: (0, 0, 0)),
            pl.BlockSpec((4, cout, 4 * cin), lambda n: (0, 0, 0)),
        ],
        out_specs=[
            pl.BlockSpec((1, 4, cout, P), lambda n: (n, 0, 0, 0)),
            pl.BlockSpec((1, cout, 2), lambda n: (n, 0, 0)),
        ],
        out_shape=(
            jax.ShapeDtypeStruct((N, 4, cout, P), out_dtype),
            jax.ShapeDtypeStruct((N, cout, 2), jnp.float32),
        ),
        compiler_params=pltpu.CompilerParams(
            dimension_semantics=("parallel",),
            vmem_limit_bytes=_VMEM_LIMIT),
    )(c1_pre, aff1, masks, w2p)


def bn_lrelu_shuffle_add(c2_pre, aff2, c3_pre, aff3, *, act, out_dtype):
    N, _, cout, P = c2_pre.shape
    kern = functools.partial(_bn_lrelu_shuffle_add_kernel, act=act)
    return pl.pallas_call(
        kern,
        grid=(N,),
        in_specs=[
            pl.BlockSpec((1, 4, cout, P), lambda n: (n, 0, 0, 0)),
            pl.BlockSpec((cout, 2), lambda n: (0, 0)),
            pl.BlockSpec((1, cout, P), lambda n: (n, 0, 0)),
            pl.BlockSpec((cout, 2), lambda n: (0, 0)),
        ],
        out_specs=pl.BlockSpec((1, 4, cout, P), lambda n: (n, 0, 0, 0)),
        out_shape=jax.ShapeDtypeStruct((N, 4, cout, P), out_dtype),
        compiler_params=pltpu.CompilerParams(
            dimension_semantics=("parallel",),
            vmem_limit_bytes=_VMEM_LIMIT),
    )(c2_pre, aff2, c3_pre, aff3)


# ---------------------------------------------------------------------------
# Host-side (glue) helpers
# ---------------------------------------------------------------------------
def _shift_masks(H, W, dtype=jnp.float32):
    """(9, 1, H*W) validity masks for flat shifts s = dy*W + dx."""
    P = H * W
    row = jnp.arange(P) // W
    col = jnp.arange(P) % W
    ms = []
    for dy in (-1, 0, 1):
        for dx in (-1, 0, 1):
            ms.append((row + dy >= 0) & (row + dy < H) &
                      (col + dx >= 0) & (col + dx < W))
    return jnp.stack(ms, axis=0)[:, None, :].astype(dtype)


def _stack_taps(w_oihw):
    """(Cout, Cin, 3, 3) OIHW -> (Cout, 9*Cin), contraction idx = t*Cin + c."""
    cout, cin = w_oihw.shape[:2]
    return jnp.transpose(w_oihw, (2, 3, 1, 0)).reshape(9 * cin, cout).T


def _fold_parity_weights(w_oihw):
    """3x3 weights folded for 'nearest-2x upsample then 3x3 conv'.

    Returns (4, Cout, 4*Cin): parity p = a*2 + b (a = output-row parity,
    b = output-col parity); contraction idx = (ku*2 + kv)*Cin + c for the
    2x2 effective taps at row offset a-1+ku, col offset b-1+kv.
    """
    cout, cin = w_oihw.shape[:2]
    F = [jnp.array([[1., 0., 0.], [0., 1., 1.]], jnp.float32),   # parity 0
         jnp.array([[1., 1., 0.], [0., 0., 1.]], jnp.float32)]   # parity 1
    slabs = []
    for a in (0, 1):
        for b in (0, 1):
            wf = jnp.einsum("uy,vx,ocyx->ocuv", F[a], F[b], w_oihw,
                            precision=jax.lax.Precision.HIGHEST)
            slabs.append(jnp.transpose(wf, (2, 3, 1, 0)).reshape(4 * cin,
                                                                 cout).T)
    return jnp.stack(slabs, axis=0)


def _finalize_affine(partials, gamma, beta, count):
    """Per-image (sum, sumsq) partials -> folded BN affine (scale, bias)."""
    s = jnp.sum(partials, axis=0)                   # (C, 2)
    mean = s[:, 0] / count
    var = jnp.maximum(s[:, 1] / count - mean * mean, 0.0)
    scale = gamma * jax.lax.rsqrt(var + BN_EPS)
    bias = beta - mean * scale
    return jnp.stack([scale, bias], axis=1).astype(jnp.float32)


# ---------------------------------------------------------------------------
# ResBlockUp forward (NCHW in / NCHW out, training-mode BatchNorm)
# ---------------------------------------------------------------------------
def resblock_up_forward(x_nchw, params, act=True):
    N, f_in, H, W = x_nchw.shape
    f_out = params["w2"].shape[0]
    P = H * W
    x = x_nchw.reshape(N, f_in, P)          # channels-first, flat lanes

    masks = _shift_masks(H, W)
    w1s = _stack_taps(params["w1"]).astype(jnp.bfloat16)
    w3s = _stack_taps(params["w3"]).astype(jnp.bfloat16)
    w2p = _fold_parity_weights(params["w2"]).astype(jnp.bfloat16)
    # Conv biases are dropped: a per-channel constant before training-mode BN
    # cancels exactly in the folded affine.

    # Kernel 1: conv1 + conv3 (shared input) + per-image BN1/BN3 partial stats.
    c1_pre, c3_pre, s1, s3 = conv13_with_stats(
        x, masks, w1s, w3s, W=W, out_dtype=jnp.bfloat16)
    aff1 = _finalize_affine(s1, params["g1"], params["be1"], float(N * P))
    aff3 = _finalize_affine(s3, params["g3"], params["be3"], float(N * P))

    # Kernel 2: BN1-apply + LeakyReLU + [2x-up -> conv2] (parity) + BN2 stats.
    c2_pre, s2 = bn_up_conv_with_stats(
        c1_pre, aff1, masks, w2p, W=W, out_dtype=jnp.bfloat16)
    aff2 = _finalize_affine(s2, params["g2"], params["be2"], float(N * 4 * P))

    # Kernel 3: BN2-apply (+lrelu) + BN3-apply + lrelu(s) + parity-bcast add.
    out_par = bn_lrelu_shuffle_add(c2_pre, aff2, c3_pre, aff3,
                                   act=act, out_dtype=x_nchw.dtype)

    # Pixel-shuffle the 4 parity slabs back to NCHW 2Hx2W (cheap XLA transpose).
    out = out_par.reshape(N, 2, 2, f_out, H, W)
    out = jnp.transpose(out, (0, 3, 4, 1, 5, 2)).reshape(N, f_out, 2 * H, 2 * W)
    return out


# ---------------------------------------------------------------------------
# Pure-JAX reference (mirrors the PyTorch module exactly, NCHW, f32 HIGHEST)
# ---------------------------------------------------------------------------
def _ref_conv(x, w, b):
    y = jax.lax.conv_general_dilated(
        x, w, window_strides=(1, 1), padding=((1, 1), (1, 1)),
        dimension_numbers=("NCHW", "OIHW", "NCHW"),
        precision=jax.lax.Precision.HIGHEST)
    return y + b[None, :, None, None]


def _ref_bn(x, g, be):
    mean = jnp.mean(x, axis=(0, 2, 3), keepdims=True)
    var = jnp.mean(jnp.square(x - mean), axis=(0, 2, 3), keepdims=True)
    return ((x - mean) * jax.lax.rsqrt(var + BN_EPS)
            * g[None, :, None, None] + be[None, :, None, None])


def _ref_up(x):
    return jnp.repeat(jnp.repeat(x, 2, axis=2), 2, axis=3)


def resblock_up_reference(x, p, act=True):
    c1 = _lrelu(_ref_bn(_ref_up(_ref_conv(x, p["w1"], p["b1"])),
                        p["g1"], p["be1"]))
    c2 = _ref_bn(_ref_conv(c1, p["w2"], p["b2"]), p["g2"], p["be2"])
    c3 = _lrelu(_ref_bn(_ref_up(_ref_conv(x, p["w3"], p["b3"])),
                        p["g3"], p["be3"]))
    if act:
        c2 = _lrelu(c2)
        c3 = _lrelu(c3)
    return c2 + c3


# ---------------------------------------------------------------------------
# Deterministic parameter construction (shapes from ResBlockUp.__init__)
# ---------------------------------------------------------------------------
def make_params(key, filters_in, filters_out):
    ks = jax.random.split(key, 6)
    bound = 1.0 / (filters_in * 9.0) ** 0.5  # PyTorch default conv init bound

    def conv_w(k, cout, cin):  # OIHW, like nn.Conv2d.weight
        return jax.random.uniform(k, (cout, cin, 3, 3), jnp.float32,
                                  -bound, bound)

    def conv_b(k, cout):
        return jax.random.uniform(k, (cout,), jnp.float32, -bound, bound)

    return {
        # conv1_block: Conv2d(f_in, f_in)
        "w1": conv_w(ks[0], filters_in, filters_in),
        "b1": conv_b(ks[1], filters_in),
        "g1": jnp.ones((filters_in,), jnp.float32),
        "be1": jnp.zeros((filters_in,), jnp.float32),
        # conv2_block: Conv2d(f_in, f_out)
        "w2": conv_w(ks[2], filters_out, filters_in),
        "b2": conv_b(ks[3], filters_out),
        "g2": jnp.ones((filters_out,), jnp.float32),
        "be2": jnp.zeros((filters_out,), jnp.float32),
        # conv3_block: Conv2d(f_in, f_out)
        "w3": conv_w(ks[4], filters_out, filters_in),
        "b3": conv_b(ks[5], filters_out),
        "g3": jnp.ones((filters_out,), jnp.float32),
        "be3": jnp.zeros((filters_out,), jnp.float32),
    }


if __name__ == "__main__":
    # Channel counts chosen as multiples of 8 so the stacked-tap sublane
    # concatenations stay tile-aligned (review item on (8,128) boundaries).
    batch, filters_in, filters_out, spatial = 2, 8, 8, 16

    key = jax.random.PRNGKey(0)
    k_x, k_p = jax.random.split(key)
    x = jax.random.normal(k_x, (batch, filters_in, spatial, spatial),
                          jnp.float32)  # NCHW, matching the PyTorch module
    params = make_params(k_p, filters_in, filters_out)

    fwd = jax.jit(functools.partial(resblock_up_forward, act=True))
    out = jax.block_until_ready(fwd(x, params))

    assert out.shape == (batch, filters_out, 2 * spatial, 2 * spatial), out.shape

    ref = jax.block_until_ready(resblock_up_reference(x, params, act=True))
    max_err = float(jnp.max(jnp.abs(out - ref)))
    # Tolerance reflects bf16 MXU operands + bf16 HBM intermediates vs an
    # f32 HIGHEST-precision reference.
    assert jnp.allclose(out, ref, atol=3e-2, rtol=3e-2), max_err

    print("KERNEL_OK")
</pallas_src>

<mosaic_0001>
module attributes {stable_mosaic.version = 11 : i64} {
  func.func @_conv13_stats_kernel(%arg0: i32, %arg1: memref<1x8x256xf32, #tpu.memory_space<vmem>>, %arg2: memref<9x1x256xf32, #tpu.memory_space<vmem>>, %arg3: memref<8x72xbf16, #tpu.memory_space<vmem>>, %arg4: memref<8x72xbf16, #tpu.memory_space<vmem>>, %arg5: memref<1x8x256xbf16, #tpu.memory_space<vmem>>, %arg6: memref<1x8x256xbf16, #tpu.memory_space<vmem>>, %arg7: memref<1x8x2xf32, #tpu.memory_space<vmem>>, %arg8: memref<1x8x2xf32, #tpu.memory_space<vmem>>) attributes {dimension_semantics = [#tpu.dimension_semantics<parallel>], iteration_bounds = array<i64: 2>, scalar_prefetch = 0 : i64, scratch_operands = 0 : i64, tpu.core_type = #tpu.core_type<tc>, window_params = [{transform_indices = @transform_0, window_bounds = array<i64: 1, 8, 256>}, {pipeline_mode = #tpu.pipeline_mode<synchronous>, transform_indices = @transform_1, window_bounds = array<i64: 9, 1, 256>}, {pipeline_mode = #tpu.pipeline_mode<synchronous>, transform_indices = @transform_2, window_bounds = array<i64: 8, 72>}, {pipeline_mode = #tpu.pipeline_mode<synchronous>, transform_indices = @transform_3, window_bounds = array<i64: 8, 72>}, {transform_indices = @transform_4, window_bounds = array<i64: 1, 8, 256>}, {transform_indices = @transform_5, window_bounds = array<i64: 1, 8, 256>}, {transform_indices = @transform_6, window_bounds = array<i64: 1, 8, 2>}, {transform_indices = @transform_7, window_bounds = array<i64: 1, 8, 2>}]} {
    %c0 = arith.constant 0 : index
    %c0_0 = arith.constant 0 : index
    %c0_1 = arith.constant 0 : index
    %0 = vector.load %arg1[%c0, %c0_0, %c0_1] : memref<1x8x256xf32, #tpu.memory_space<vmem>>, vector<1x8x256xf32>
    %1 = vector.shape_cast %0 : vector<1x8x256xf32> to vector<8x256xf32>
    %c17_i32 = arith.constant 17 : i32
    %2 = tpu.dynamic_rotate %1 by %c17_i32 dim 1 : vector<8x256xf32>, i32 -> vector<8x256xf32>
    %c0_2 = arith.constant 0 : index
    %c0_3 = arith.constant 0 : index
    %c0_4 = arith.constant 0 : index
    %3 = vector.load %arg2[%c0_2, %c0_3, %c0_4] : memref<9x1x256xf32, #tpu.memory_space<vmem>>, vector<1x1x256xf32>
    %4 = vector.shape_cast %3 : vector<1x1x256xf32> to vector<1x256xf32>
    %5 = vector.broadcast %4 : vector<1x256xf32> to vector<8x256xf32>
    %6 = arith.mulf %2, %5 : vector<8x256xf32>
    %c16_i32 = arith.constant 16 : i32
    %7 = tpu.dynamic_rotate %1 by %c16_i32 dim 1 : vector<8x256xf32>, i32 -> vector<8x256xf32>
    %c1 = arith.constant 1 : index
    %c0_5 = arith.constant 0 : index
    %c0_6 = arith.constant 0 : index
    %8 = vector.load %arg2[%c1, %c0_5, %c0_6] : memref<9x1x256xf32, #tpu.memory_space<vmem>>, vector<1x1x256xf32>
    %9 = vector.shape_cast %8 : vector<1x1x256xf32> to vector<1x256xf32>
    %10 = vector.broadcast %9 : vector<1x256xf32> to vector<8x256xf32>
    %11 = arith.mulf %7, %10 : vector<8x256xf32>
    %c15_i32 = arith.constant 15 : i32
    %12 = tpu.dynamic_rotate %1 by %c15_i32 dim 1 : vector<8x256xf32>, i32 -> vector<8x256xf32>
    %c2 = arith.constant 2 : index
    %c0_7 = arith.constant 0 : index
    %c0_8 = arith.constant 0 : index
    %13 = vector.load %arg2[%c2, %c0_7, %c0_8] : memref<9x1x256xf32, #tpu.memory_space<vmem>>, vector<1x1x256xf32>
    %14 = vector.shape_cast %13 : vector<1x1x256xf32> to vector<1x256xf32>
    %15 = vector.broadcast %14 : vector<1x256xf32> to vector<8x256xf32>
    %16 = arith.mulf %12, %15 : vector<8x256xf32>
    %c1_i32 = arith.constant 1 : i32
    %17 = tpu.dynamic_rotate %1 by %c1_i32 dim 1 : vector<8x256xf32>, i32 -> vector<8x256xf32>
    %c3 = arith.constant 3 : index
    %c0_9 = arith.constant 0 : index
    %c0_10 = arith.constant 0 : index
    %18 = vector.load %arg2[%c3, %c0_9, %c0_10] : memref<9x1x256xf32, #tpu.memory_space<vmem>>, vector<1x1x256xf32>
    %19 = vector.shape_cast %18 : vector<1x1x256xf32> to vector<1x256xf32>
    %20 = vector.broadcast %19 : vector<1x256xf32> to vector<8x256xf32>
    %21 = arith.mulf %17, %20 : vector<8x256xf32>
    %c4 = arith.constant 4 : index
    %c0_11 = arith.constant 0 : index
    %c0_12 = arith.constant 0 : index
    %22 = vector.load %arg2[%c4, %c0_11, %c0_12] : memref<9x1x256xf32, #tpu.memory_space<vmem>>, vector<1x1x256xf32>
    %23 = vector.shape_cast %22 : vector<1x1x256xf32> to vector<1x256xf32>
    %24 = vector.broadcast %23 : vector<1x256xf32> to vector<8x256xf32>
    %25 = arith.mulf %1, %24 : vector<8x256xf32>
    %c255_i32 = arith.constant 255 : i32
    %26 = tpu.dynamic_rotate %1 by %c255_i32 dim 1 : vector<8x256xf32>, i32 -> vector<8x256xf32>
    %c5 = arith.constant 5 : index
    %c0_13 = arith.constant 0 : index
    %c0_14 = arith.constant 0 : index
    %27 = vector.load %arg2[%c5, %c0_13, %c0_14] : memref<9x1x256xf32, #tpu.memory_space<vmem>>, vector<1x1x256xf32>
    %28 = vector.shape_cast %27 : vector<1x1x256xf32> to vector<1x256xf32>
    %29 = vector.broadcast %28 : vector<1x256xf32> to vector<8x256xf32>
    %30 = arith.mulf %26, %29 : vector<8x256xf32>
    %c241_i32 = arith.constant 241 : i32
    %31 = tpu.dynamic_rotate %1 by %c241_i32 dim 1 : vector<8x256xf32>, i32 -> vector<8x256xf32>
    %c6 = arith.constant 6 : index
    %c0_15 = arith.constant 0 : index
    %c0_16 = arith.constant 0 : index
    %32 = vector.load %arg2[%c6, %c0_15, %c0_16] : memref<9x1x256xf32, #tpu.memory_space<vmem>>, vector<1x1x256xf32>
    %33 = vector.shape_cast %32 : vector<1x1x256xf32> to vector<1x256xf32>
    %34 = vector.broadcast %33 : vector<1x256xf32> to vector<8x256xf32>
    %35 = arith.mulf %31, %34 : vector<8x256xf32>
    %c240_i32 = arith.constant 240 : i32
    %36 = tpu.dynamic_rotate %1 by %c240_i32 dim 1 : vector<8x256xf32>, i32 -> vector<8x256xf32>
    %c7 = arith.constant 7 : index
    %c0_17 = arith.constant 0 : index
    %c0_18 = arith.constant 0 : index
    %37 = vector.load %arg2[%c7, %c0_17, %c0_18] : memref<9x1x256xf32, #tpu.memory_space<vmem>>, vector<1x1x256xf32>
    %38 = vector.shape_cast %37 : vector<1x1x256xf32> to vector<1x256xf32>
    %39 = vector.broadcast %38 : vector<1x256xf32> to vector<8x256xf32>
    %40 = arith.mulf %36, %39 : vector<8x256xf32>
    %c239_i32 = arith.constant 239 : i32
    %41 = tpu.dynamic_rotate %1 by %c239_i32 dim 1 : vector<8x256xf32>, i32 -> vector<8x256xf32>
    %c8 = arith.constant 8 : index
    %c0_19 = arith.constant 0 : index
    %c0_20 = arith.constant 0 : index
    %42 = vector.load %arg2[%c8, %c0_19, %c0_20] : memref<9x1x256xf32, #tpu.memory_space<vmem>>, vector<1x1x256xf32>
    %43 = vector.shape_cast %42 : vector<1x1x256xf32> to vector<1x256xf32>
    %44 = vector.broadcast %43 : vector<1x256xf32> to vector<8x256xf32>
    %45 = arith.mulf %41, %44 : vector<8x256xf32>
    %46 = tpu.concatenate %6, %11, %16, %21, %25, %30, %35, %40, %45 in 0 : vector<8x256xf32>, vector<8x256xf32>, vector<8x256xf32>, vector<8x256xf32>, vector<8x256xf32>, vector<8x256xf32>, vector<8x256xf32>, vector<8x256xf32>, vector<8x256xf32> -> vector<72x256xf32>
    %47 = arith.truncf %46 : vector<72x256xf32> to vector<72x256xbf16>
    %c0_21 = arith.constant 0 : index
    %c0_22 = arith.constant 0 : index
    %48 = vector.load %arg3[%c0_21, %c0_22] : memref<8x72xbf16, #tpu.memory_space<vmem>>, vector<8x72xbf16>
    %cst = arith.constant dense<0.000000e+00> : vector<8x256xf32>
    %49 = tpu.matmul %48, %47, %cst {dimension_numbers = #tpu.dot_dimension_numbers<[1], [0], [0], [1], [0, 0, 1, 1], [], []>} : vector<8x72xbf16>, vector<72x256xbf16>, vector<8x256xf32> -> vector<8x256xf32>
    %c0_23 = arith.constant 0 : index
    %c0_24 = arith.constant 0 : index
    %50 = vector.load %arg4[%c0_23, %c0_24] : memref<8x72xbf16, #tpu.memory_space<vmem>>, vector<8x72xbf16>
    %cst_25 = arith.constant dense<0.000000e+00> : vector<8x256xf32>
    %51 = tpu.matmul %50, %47, %cst_25 {dimension_numbers = #tpu.dot_dimension_numbers<[1], [0], [0], [1], [0, 0, 1, 1], [], []>} : vector<8x72xbf16>, vector<72x256xbf16>, vector<8x256xf32> -> vector<8x256xf32>
    %52 = arith.truncf %49 : vector<8x256xf32> to vector<8x256xbf16>
    %c0_26 = arith.constant 0 : index
    %c0_27 = arith.constant 0 : index
    %c0_28 = arith.constant 0 : index
    %53 = vector.load %arg5[%c0_26, %c0_27, %c0_28] : memref<1x8x256xbf16, #tpu.memory_space<vmem>>, vector<1x8x256xbf16>
    %54 = vector.shape_cast %53 : vector<1x8x256xbf16> to vector<8x256xbf16>
    %55 = vector.shape_cast %52 : vector<8x256xbf16> to vector<1x8x256xbf16>
    tpu.vector_store %arg5[%c0_26, %c0_27, %c0_28], %55 {strides = array<i32>} : memref<1x8x256xbf16, #tpu.memory_space<vmem>>, vector<1x8x256xbf16>,
    %56 = arith.truncf %51 : vector<8x256xf32> to vector<8x256xbf16>
    %c0_29 = arith.constant 0 : index
    %c0_30 = arith.constant 0 : index
    %c0_31 = arith.constant 0 : index
    %57 = vector.load %arg6[%c0_29, %c0_30, %c0_31] : memref<1x8x256xbf16, #tpu.memory_space<vmem>>, vector<1x8x256xbf16>
    %58 = vector.shape_cast %57 : vector<1x8x256xbf16> to vector<8x256xbf16>
    %59 = vector.shape_cast %56 : vector<8x256xbf16> to vector<1x8x256xbf16>
    tpu.vector_store %arg6[%c0_29, %c0_30, %c0_31], %59 {strides = array<i32>} : memref<1x8x256xbf16, #tpu.memory_space<vmem>>, vector<1x8x256xbf16>,
    %cst_32 = arith.constant dense<0.000000e+00> : vector<8xf32>
    %60 = vector.multi_reduction <add>, %49, %cst_32 [1] : vector<8x256xf32> to vector<8xf32>
    %61 = vector.shape_cast %60 : vector<8xf32> to vector<8x1xf32>
    %62 = arith.mulf %49, %49 : vector<8x256xf32>
    %cst_33 = arith.constant dense<0.000000e+00> : vector<8xf32>
    %63 = vector.multi_reduction <add>, %62, %cst_33 [1] : vector<8x256xf32> to vector<8xf32>
    %64 = vector.shape_cast %63 : vector<8xf32> to vector<8x1xf32>
    %65 = tpu.concatenate %61, %64 in 1 : vector<8x1xf32>, vector<8x1xf32> -> vector<8x2xf32>
    %c0_34 = arith.constant 0 : index
    %c0_35 = arith.constant 0 : index
    %c0_36 = arith.constant 0 : index
    %66 = vector.load %arg7[%c0_34, %c0_35, %c0_36] : memref<1x8x2xf32, #tpu.memory_space<vmem>>, vector<1x8x2xf32>
    %67 = vector.shape_cast %66 : vector<1x8x2xf32> to vector<8x2xf32>
    %68 = vector.shape_cast %65 : vector<8x2xf32> to vector<1x8x2xf32>
    tpu.vector_store %arg7[%c0_34, %c0_35, %c0_36], %68 {strides = array<i32>} : memref<1x8x2xf32, #tpu.memory_space<vmem>>, vector<1x8x2xf32>,
    %cst_37 = arith.constant dense<0.000000e+00> : vector<8xf32>
    %69 = vector.multi_reduction <add>, %51, %cst_37 [1] : vector<8x256xf32> to vector<8xf32>
    %70 = vector.shape_cast %69 : vector<8xf32> to vector<8x1xf32>
    %71 = arith.mulf %51, %51 : vector<8x256xf32>
    %cst_38 = arith.constant dense<0.000000e+00> : vector<8xf32>
    %72 = vector.multi_reduction <add>, %71, %cst_38 [1] : vector<8x256xf32> to vector<8xf32>
    %73 = vector.shape_cast %72 : vector<8xf32> to vector<8x1xf32>
    %74 = tpu.concatenate %70, %73 in 1 : vector<8x1xf32>, vector<8x1xf32> -> vector<8x2xf32>
    %c0_39 = arith.constant 0 : index
    %c0_40 = arith.constant 0 : index
    %c0_41 = arith.constant 0 : index
    %75 = vector.load %arg8[%c0_39, %c0_40, %c0_41] : memref<1x8x2xf32, #tpu.memory_space<vmem>>, vector<1x8x2xf32>
    %76 = vector.shape_cast %75 : vector<1x8x2xf32> to vector<8x2xf32>
    %77 = vector.shape_cast %74 : vector<8x2xf32> to vector<1x8x2xf32>
    tpu.vector_store %arg8[%c0_39, %c0_40, %c0_41], %77 {strides = array<i32>} : memref<1x8x2xf32, #tpu.memory_space<vmem>>, vector<1x8x2xf32>,
    return
  }
  func.func @transform_0(%arg0: i32) -> (i32, i32, i32) {
    %c0_i32 = arith.constant 0 : i32
    %c0_i32_0 = arith.constant 0 : i32
    %c0_i32_1 = arith.constant 0 : i32
    return %arg0, %c0_i32, %c0_i32_0 : i32, i32, i32
  }
  func.func @transform_1(%arg0: i32) -> (i32, i32, i32) {
    %c0_i32 = arith.constant 0 : i32
    %c0_i32_0 = arith.constant 0 : i32
    %c0_i32_1 = arith.constant 0 : i32
    %c0_i32_2 = arith.constant 0 : i32
    return %c0_i32, %c0_i32_0, %c0_i32_1 : i32, i32, i32
  }
  func.func @transform_2(%arg0: i32) -> (i32, i32) {
    %c0_i32 = arith.constant 0 : i32
    %c0_i32_0 = arith.constant 0 : i32
    %c0_i32_1 = arith.constant 0 : i32
    return %c0_i32, %c0_i32_0 : i32, i32
  }
  func.func @transform_3(%arg0: i32) -> (i32, i32) {
    %c0_i32 = arith.constant 0 : i32
    %c0_i32_0 = arith.constant 0 : i32
    %c0_i32_1 = arith.constant 0 : i32
    return %c0_i32, %c0_i32_0 : i32, i32
  }
  func.func @transform_4(%arg0: i32) -> (i32, i32, i32) {
    %c0_i32 = arith.constant 0 : i32
    %c0_i32_0 = arith.constant 0 : i32
    %c0_i32_1 = arith.constant 0 : i32
    return %arg0, %c0_i32, %c0_i32_0 : i32, i32, i32
  }
  func.func @transform_5(%arg0: i32) -> (i32, i32, i32) {
    %c0_i32 = arith.constant 0 : i32
    %c0_i32_0 = arith.constant 0 : i32
    %c0_i32_1 = arith.constant 0 : i32
    return %arg0, %c0_i32, %c0_i32_0 : i32, i32, i32
  }
  func.func @transform_6(%arg0: i32) -> (i32, i32, i32) {
    %c0_i32 = arith.constant 0 : i32
    %c0_i32_0 = arith.constant 0 : i32
    %c0_i32_1 = arith.constant 0 : i32
    return %arg0, %c0_i32, %c0_i32_0 : i32, i32, i32
  }
  func.func @transform_7(%arg0: i32) -> (i32, i32, i32) {
    %c0_i32 = arith.constant 0 : i32
    %c0_i32_0 = arith.constant 0 : i32
    %c0_i32_1 = arith.constant 0 : i32
    return %arg0, %c0_i32, %c0_i32_0 : i32, i32, i32
  }
}

module attributes {stable_mosaic.version = 11 : i64} {
  func.func @_bn_up_conv_stats_kernel(%arg0: i32, %arg1: memref<1x8x256xbf16, #tpu.memory_space<vmem>>, %arg2: memref<8x2xf32, #tpu.memory_space<vmem>>, %arg3: memref<9x1x256xf32, #tpu.memory_space<vmem>>, %arg4: memref<4x8x32xbf16, #tpu.memory_space<vmem>>, %arg5: memref<1x4x8x256xbf16, #tpu.memory_space<vmem>>, %arg6: memref<1x8x2xf32, #tpu.memory_space<vmem>>) attributes {dimension_semantics = [#tpu.dimension_semantics<parallel>], iteration_bounds = array<i64: 2>, scalar_prefetch = 0 : i64, scratch_operands = 0 : i64, tpu.core_type = #tpu.core_type<tc>, window_params = [{transform_indices = @transform_0, window_bounds = array<i64: 1, 8, 256>}, {pipeline_mode = #tpu.pipeline_mode<synchronous>, transform_indices = @transform_1, window_bounds = array<i64: 8, 2>}, {pipeline_mode = #tpu.pipeline_mode<synchronous>, transform_indices = @transform_2, window_bounds = array<i64: 9, 1, 256>}, {pipeline_mode = #tpu.pipeline_mode<synchronous>, transform_indices = @transform_3, window_bounds = array<i64: 4, 8, 32>}, {transform_indices = @transform_4, window_bounds = array<i64: 1, 4, 8, 256>}, {transform_indices = @transform_5, window_bounds = array<i64: 1, 8, 2>}]} {
    %c0 = arith.constant 0 : index
    %c0_0 = arith.constant 0 : index
    %c0_1 = arith.constant 0 : index
    %0 = vector.load %arg1[%c0, %c0_0, %c0_1] : memref<1x8x256xbf16, #tpu.memory_space<vmem>>, vector<1x8x256xbf16>
    %1 = vector.shape_cast %0 : vector<1x8x256xbf16> to vector<8x256xbf16>
    %2 = arith.extf %1 : vector<8x256xbf16> to vector<8x256xf32>
    %c0_2 = arith.constant 0 : index
    %c0_3 = arith.constant 0 : index
    %3 = vector.load %arg2[%c0_2, %c0_3] : memref<8x2xf32, #tpu.memory_space<vmem>>, vector<8x1xf32>
    %4 = vector.broadcast %3 : vector<8x1xf32> to vector<8x256xf32>
    %5 = arith.mulf %2, %4 : vector<8x256xf32>
    %c0_4 = arith.constant 0 : index
    %c1 = arith.constant 1 : index
    %6 = vector.load %arg2[%c0_4, %c1] : memref<8x2xf32, #tpu.memory_space<vmem>>, vector<8x1xf32>
    %7 = vector.broadcast %6 : vector<8x1xf32> to vector<8x256xf32>
    %8 = arith.addf %5, %7 : vector<8x256xf32>
    %cst = arith.constant 0.000000e+00 : f32
    %9 = vector.broadcast %cst : f32 to vector<8x256xf32>
    %10 = arith.cmpf oge, %8, %9 : vector<8x256xf32>
    %cst_5 = arith.constant 2.000000e-01 : f32
    %11 = vector.broadcast %cst_5 : f32 to vector<8x256xf32>
    %12 = arith.mulf %11, %8 : vector<8x256xf32>
    %13 = arith.select %10, %8, %12 : vector<8x256xi1>, vector<8x256xf32>
    %c17_i32 = arith.constant 17 : i32
    %14 = tpu.dynamic_rotate %13 by %c17_i32 dim 1 : vector<8x256xf32>, i32 -> vector<8x256xf32>
    %c0_6 = arith.constant 0 : index
    %c0_7 = arith.constant 0 : index
    %c0_8 = arith.constant 0 : index
    %15 = vector.load %arg3[%c0_6, %c0_7, %c0_8] : memref<9x1x256xf32, #tpu.memory_space<vmem>>, vector<1x1x256xf32>
    %16 = vector.shape_cast %15 : vector<1x1x256xf32> to vector<1x256xf32>
    %17 = vector.broadcast %16 : vector<1x256xf32> to vector<8x256xf32>
    %18 = arith.mulf %14, %17 : vector<8x256xf32>
    %c16_i32 = arith.constant 16 : i32
    %19 = tpu.dynamic_rotate %13 by %c16_i32 dim 1 : vector<8x256xf32>, i32 -> vector<8x256xf32>
    %c1_9 = arith.constant 1 : index
    %c0_10 = arith.constant 0 : index
    %c0_11 = arith.constant 0 : index
    %20 = vector.load %arg3[%c1_9, %c0_10, %c0_11] : memref<9x1x256xf32, #tpu.memory_space<vmem>>, vector<1x1x256xf32>
    %21 = vector.shape_cast %20 : vector<1x1x256xf32> to vector<1x256xf32>
    %22 = vector.broadcast %21 : vector<1x256xf32> to vector<8x256xf32>
    %23 = arith.mulf %19, %22 : vector<8x256xf32>
    %c15_i32 = arith.constant 15 : i32
    %24 = tpu.dynamic_rotate %13 by %c15_i32 dim 1 : vector<8x256xf32>, i32 -> vector<8x256xf32>
    %c2 = arith.constant 2 : index
    %c0_12 = arith.constant 0 : index
    %c0_13 = arith.constant 0 : index
    %25 = vector.load %arg3[%c2, %c0_12, %c0_13] : memref<9x1x256xf32, #tpu.memory_space<vmem>>, vector<1x1x256xf32>
    %26 = vector.shape_cast %25 : vector<1x1x256xf32> to vector<1x256xf32>
    %27 = vector.broadcast %26 : vector<1x256xf32> to vector<8x256xf32>
    %28 = arith.mulf %24, %27 : vector<8x256xf32>
    %c1_i32 = arith.constant 1 : i32
    %29 = tpu.dynamic_rotate %13 by %c1_i32 dim 1 : vector<8x256xf32>, i32 -> vector<8x256xf32>
    %c3 = arith.constant 3 : index
    %c0_14 = arith.constant 0 : index
    %c0_15 = arith.constant 0 : index
    %30 = vector.load %arg3[%c3, %c0_14, %c0_15] : memref<9x1x256xf32, #tpu.memory_space<vmem>>, vector<1x1x256xf32>
    %31 = vector.shape_cast %30 : vector<1x1x256xf32> to vector<1x256xf32>
    %32 = vector.broadcast %31 : vector<1x256xf32> to vector<8x256xf32>
    %33 = arith.mulf %29, %32 : vector<8x256xf32>
    %c4 = arith.constant 4 : index
    %c0_16 = arith.constant 0 : index
    %c0_17 = arith.constant 0 : index
    %34 = vector.load %arg3[%c4, %c0_16, %c0_17] : memref<9x1x256xf32, #tpu.memory_space<vmem>>, vector<1x1x256xf32>
    %35 = vector.shape_cast %34 : vector<1x1x256xf32> to vector<1x256xf32>
    %36 = vector.broadcast %35 : vector<1x256xf32> to vector<8x256xf32>
    %37 = arith.mulf %13, %36 : vector<8x256xf32>
    %c255_i32 = arith.constant 255 : i32
    %38 = tpu.dynamic_rotate %13 by %c255_i32 dim 1 : vector<8x256xf32>, i32 -> vector<8x256xf32>
    %c5 = arith.constant 5 : index
    %c0_18 = arith.constant 0 : index
    %c0_19 = arith.constant 0 : index
    %39 = vector.load %arg3[%c5, %c0_18, %c0_19] : memref<9x1x256xf32, #tpu.memory_space<vmem>>, vector<1x1x256xf32>
    %40 = vector.shape_cast %39 : vector<1x1x256xf32> to vector<1x256xf32>
    %41 = vector.broadcast %40 : vector<1x256xf32> to vector<8x256xf32>
    %42 = arith.mulf %38, %41 : vector<8x256xf32>
    %c241_i32 = arith.constant 241 : i32
    %43 = tpu.dynamic_rotate %13 by %c241_i32 dim 1 : vector<8x256xf32>, i32 -> vector<8x256xf32>
    %c6 = arith.constant 6 : index
    %c0_20 = arith.constant 0 : index
    %c0_21 = arith.constant 0 : index
    %44 = vector.load %arg3[%c6, %c0_20, %c0_21] : memref<9x1x256xf32, #tpu.memory_space<vmem>>, vector<1x1x256xf32>
    %45 = vector.shape_cast %44 : vector<1x1x256xf32> to vector<1x256xf32>
    %46 = vector.broadcast %45 : vector<1x256xf32> to vector<8x256xf32>
    %47 = arith.mulf %43, %46 : vector<8x256xf32>
    %c240_i32 = arith.constant 240 : i32
    %48 = tpu.dynamic_rotate %13 by %c240_i32 dim 1 : vector<8x256xf32>, i32 -> vector<8x256xf32>
    %c7 = arith.constant 7 : index
    %c0_22 = arith.constant 0 : index
    %c0_23 = arith.constant 0 : index
    %49 = vector.load %arg3[%c7, %c0_22, %c0_23] : memref<9x1x256xf32, #tpu.memory_space<vmem>>, vector<1x1x256xf32>
    %50 = vector.shape_cast %49 : vector<1x1x256xf32> to vector<1x256xf32>
    %51 = vector.broadcast %50 : vector<1x256xf32> to vector<8x256xf32>
    %52 = arith.mulf %48, %51 : vector<8x256xf32>
    %c239_i32 = arith.constant 239 : i32
    %53 = tpu.dynamic_rotate %13 by %c239_i32 dim 1 : vector<8x256xf32>, i32 -> vector<8x256xf32>
    %c8 = arith.constant 8 : index
    %c0_24 = arith.constant 0 : index
    %c0_25 = arith.constant 0 : index
    %54 = vector.load %arg3[%c8, %c0_24, %c0_25] : memref<9x1x256xf32, #tpu.memory_space<vmem>>, vector<1x1x256xf32>
    %55 = vector.shape_cast %54 : vector<1x1x256xf32> to vector<1x256xf32>
    %56 = vector.broadcast %55 : vector<1x256xf32> to vector<8x256xf32>
    %57 = arith.mulf %53, %56 : vector<8x256xf32>
    %cst_26 = arith.constant 0.000000e+00 : f32
    %58 = vector.broadcast %cst_26 : f32 to vector<8x1xf32>
    %cst_27 = arith.constant 0.000000e+00 : f32
    %59 = vector.broadcast %cst_27 : f32 to vector<8x1xf32>
    %60 = tpu.concatenate %18, %23, %33, %37 in 0 : vector<8x256xf32>, vector<8x256xf32>, vector<8x256xf32>, vector<8x256xf32> -> vector<32x256xf32>
    %61 = arith.truncf %60 : vector<32x256xf32> to vector<32x256xbf16>
    %c0_28 = arith.constant 0 : index
    %c0_29 = arith.constant 0 : index
    %c0_30 = arith.constant 0 : index
    %62 = vector.load %arg4[%c0_28, %c0_29, %c0_30] : memref<4x8x32xbf16, #tpu.memory_space<vmem>>, vector<1x8x32xbf16>
    %63 = vector.shape_cast %62 : vector<1x8x32xbf16> to vector<8x32xbf16>
    %cst_31 = arith.constant dense<0.000000e+00> : vector<8x256xf32>
    %64 = tpu.matmul %63, %61, %cst_31 {dimension_numbers = #tpu.dot_dimension_numbers<[1], [0], [0], [1], [0, 0, 1, 1], [], []>} : vector<8x32xbf16>, vector<32x256xbf16>, vector<8x256xf32> -> vector<8x256xf32>
    %65 = arith.truncf %64 : vector<8x256xf32> to vector<8x256xbf16>
    %c0_32 = arith.constant 0 : index
    %c0_33 = arith.constant 0 : index
    %c0_34 = arith.constant 0 : index
    %c0_35 = arith.constant 0 : index
    %66 = vector.load %arg5[%c0_32, %c0_33, %c0_34, %c0_35] : memref<1x4x8x256xbf16, #tpu.memory_space<vmem>>, vector<1x1x8x256xbf16>
    %67 = vector.shape_cast %66 : vector<1x1x8x256xbf16> to vector<8x256xbf16>
    %68 = vector.shape_cast %65 : vector<8x256xbf16> to vector<1x1x8x256xbf16>
    tpu.vector_store %arg5[%c0_32, %c0_33, %c0_34, %c0_35], %68 {strides = array<i32>} : memref<1x4x8x256xbf16, #tpu.memory_space<vmem>>, vector<1x1x8x256xbf16>,
    %cst_36 = arith.constant dense<0.000000e+00> : vector<8xf32>
    %69 = vector.multi_reduction <add>, %64, %cst_36 [1] : vector<8x256xf32> to vector<8xf32>
    %70 = vector.shape_cast %69 : vector<8xf32> to vector<8x1xf32>
    %71 = arith.addf %58, %70 : vector<8x1xf32>
    %72 = arith.mulf %64, %64 : vector<8x256xf32>
    %cst_37 = arith.constant dense<0.000000e+00> : vector<8xf32>
    %73 = vector.multi_reduction <add>, %72, %cst_37 [1] : vector<8x256xf32> to vector<8xf32>
    %74 = vector.shape_cast %73 : vector<8xf32> to vector<8x1xf32>
    %75 = arith.addf %59, %74 : vector<8x1xf32>
    %76 = tpu.concatenate %23, %28, %37, %42 in 0 : vector<8x256xf32>, vector<8x256xf32>, vector<8x256xf32>, vector<8x256xf32> -> vector<32x256xf32>
    %77 = arith.truncf %76 : vector<32x256xf32> to vector<32x256xbf16>
    %c1_38 = arith.constant 1 : index
    %c0_39 = arith.constant 0 : index
    %c0_40 = arith.constant 0 : index
    %78 = vector.load %arg4[%c1_38, %c0_39, %c0_40] : memref<4x8x32xbf16, #tpu.memory_space<vmem>>, vector<1x8x32xbf16>
    %79 = vector.shape_cast %78 : vector<1x8x32xbf16> to vector<8x32xbf16>
    %cst_41 = arith.constant dense<0.000000e+00> : vector<8x256xf32>
    %80 = tpu.matmul %79, %77, %cst_41 {dimension_numbers = #tpu.dot_dimension_numbers<[1], [0], [0], [1], [0, 0, 1, 1], [], []>} : vector<8x32xbf16>, vector<32x256xbf16>, vector<8x256xf32> -> vector<8x256xf32>
    %81 = arith.truncf %80 : vector<8x256xf32> to vector<8x256xbf16>
    %c0_42 = arith.constant 0 : index
    %c1_43 = arith.constant 1 : index
    %c0_44 = arith.constant 0 : index
    %c0_45 = arith.constant 0 : index
    %82 = vector.load %arg5[%c0_42, %c1_43, %c0_44, %c0_45] : memref<1x4x8x256xbf16, #tpu.memory_space<vmem>>, vector<1x1x8x256xbf16>
    %83 = vector.shape_cast %82 : vector<1x1x8x256xbf16> to vector<8x256xbf16>
    %84 = vector.shape_cast %81 : vector<8x256xbf16> to vector<1x1x8x256xbf16>
    tpu.vector_store %arg5[%c0_42, %c1_43, %c0_44, %c0_45], %84 {strides = array<i32>} : memref<1x4x8x256xbf16, #tpu.memory_space<vmem>>, vector<1x1x8x256xbf16>,
    %cst_46 = arith.constant dense<0.000000e+00> : vector<8xf32>
    %85 = vector.multi_reduction <add>, %80, %cst_46 [1] : vector<8x256xf32> to vector<8xf32>
    %86 = vector.shape_cast %85 : vector<8xf32> to vector<8x1xf32>
    %87 = arith.addf %71, %86 : vector<8x1xf32>
    %88 = arith.mulf %80, %80 : vector<8x256xf32>
    %cst_47 = arith.constant dense<0.000000e+00> : vector<8xf32>
    %89 = vector.multi_reduction <add>, %88, %cst_47 [1] : vector<8x256xf32> to vector<8xf32>
    %90 = vector.shape_cast %89 : vector<8xf32> to vector<8x1xf32>
    %91 = arith.addf %75, %90 : vector<8x1xf32>
    %92 = tpu.concatenate %33, %37, %47, %52 in 0 : vector<8x256xf32>, vector<8x256xf32>, vector<8x256xf32>, vector<8x256xf32> -> vector<32x256xf32>
    %93 = arith.truncf %92 : vector<32x256xf32> to vector<32x256xbf16>
    %c2_48 = arith.constant 2 : index
    %c0_49 = arith.constant 0 : index
    %c0_50 = arith.constant 0 : index
    %94 = vector.load %arg4[%c2_48, %c0_49, %c0_50] : memref<4x8x32xbf16, #tpu.memory_space<vmem>>, vector<1x8x32xbf16>
    %95 = vector.shape_cast %94 : vector<1x8x32xbf16> to vector<8x32xbf16>
    %cst_51 = arith.constant dense<0.000000e+00> : vector<8x256xf32>
    %96 = tpu.matmul %95, %93, %cst_51 {dimension_numbers = #tpu.dot_dimension_numbers<[1], [0], [0], [1], [0, 0, 1, 1], [], []>} : vector<8x32xbf16>, vector<32x256xbf16>, vector<8x256xf32> -> vector<8x256xf32>
    %97 = arith.truncf %96 : vector<8x256xf32> to vector<8x256xbf16>
    %c0_52 = arith.constant 0 : index
    %c2_53 = arith.constant 2 : index
    %c0_54 = arith.constant 0 : index
    %c0_55 = arith.constant 0 : index
    %98 = vector.load %arg5[%c0_52, %c2_53, %c0_54, %c0_55] : memref<1x4x8x256xbf16, #tpu.memory_space<vmem>>, vector<1x1x8x256xbf16>
    %99 = vector.shape_cast %98 : vector<1x1x8x256xbf16> to vector<8x256xbf16>
    %100 = vector.shape_cast %97 : vector<8x256xbf16> to vector<1x1x8x256xbf16>
    tpu.vector_store %arg5[%c0_52, %c2_53, %c0_54, %c0_55], %100 {strides = array<i32>} : memref<1x4x8x256xbf16, #tpu.memory_space<vmem>>, vector<1x1x8x256xbf16>,
    %cst_56 = arith.constant dense<0.000000e+00> : vector<8xf32>
    %101 = vector.multi_reduction <add>, %96, %cst_56 [1] : vector<8x256xf32> to vector<8xf32>
    %102 = vector.shape_cast %101 : vector<8xf32> to vector<8x1xf32>
    %103 = arith.addf %87, %102 : vector<8x1xf32>
    %104 = arith.mulf %96, %96 : vector<8x256xf32>
    %cst_57 = arith.constant dense<0.000000e+00> : vector<8xf32>
    %105 = vector.multi_reduction <add>, %104, %cst_57 [1] : vector<8x256xf32> to vector<8xf32>
    %106 = vector.shape_cast %105 : vector<8xf32> to vector<8x1xf32>
    %107 = arith.addf %91, %106 : vector<8x1xf32>
    %108 = tpu.concatenate %37, %42, %52, %57 in 0 : vector<8x256xf32>, vector<8x256xf32>, vector<8x256xf32>, vector<8x256xf32> -> vector<32x256xf32>
    %109 = arith.truncf %108 : vector<32x256xf32> to vector<32x256xbf16>
    %c3_58 = arith.constant 3 : index
    %c0_59 = arith.constant 0 : index
    %c0_60 = arith.constant 0 : index
    %110 = vector.load %arg4[%c3_58, %c0_59, %c0_60] : memref<4x8x32xbf16, #tpu.memory_space<vmem>>, vector<1x8x32xbf16>
    %111 = vector.shape_cast %110 : vector<1x8x32xbf16> to vector<8x32xbf16>
    %cst_61 = arith.constant dense<0.000000e+00> : vector<8x256xf32>
    %112 = tpu.matmul %111, %109, %cst_61 {dimension_numbers = #tpu.dot_dimension_numbers<[1], [0], [0], [1], [0, 0, 1, 1], [], []>} : vector<8x32xbf16>, vector<32x256xbf16>, vector<8x256xf32> -> vector<8x256xf32>
    %113 = arith.truncf %112 : vector<8x256xf32> to vector<8x256xbf16>
    %c0_62 = arith.constant 0 : index
    %c3_63 = arith.constant 3 : index
    %c0_64 = arith.constant 0 : index
    %c0_65 = arith.constant 0 : index
    %114 = vector.load %arg5[%c0_62, %c3_63, %c0_64, %c0_65] : memref<1x4x8x256xbf16, #tpu.memory_space<vmem>>, vector<1x1x8x256xbf16>
    %115 = vector.shape_cast %114 : vector<1x1x8x256xbf16> to vector<8x256xbf16>
    %116 = vector.shape_cast %113 : vector<8x256xbf16> to vector<1x1x8x256xbf16>
    tpu.vector_store %arg5[%c0_62, %c3_63, %c0_64, %c0_65], %116 {strides = array<i32>} : memref<1x4x8x256xbf16, #tpu.memory_space<vmem>>, vector<1x1x8x256xbf16>,
    %cst_66 = arith.constant dense<0.000000e+00> : vector<8xf32>
    %117 = vector.multi_reduction <add>, %112, %cst_66 [1] : vector<8x256xf32> to vector<8xf32>
    %118 = vector.shape_cast %117 : vector<8xf32> to vector<8x1xf32>
    %119 = arith.addf %103, %118 : vector<8x1xf32>
    %120 = arith.mulf %112, %112 : vector<8x256xf32>
    %cst_67 = arith.constant dense<0.000000e+00> : vector<8xf32>
    %121 = vector.multi_reduction <add>, %120, %cst_67 [1] : vector<8x256xf32> to vector<8xf32>
    %122 = vector.shape_cast %121 : vector<8xf32> to vector<8x1xf32>
    %123 = arith.addf %107, %122 : vector<8x1xf32>
    %124 = tpu.concatenate %119, %123 in 1 : vector<8x1xf32>, vector<8x1xf32> -> vector<8x2xf32>
    %c0_68 = arith.constant 0 : index
    %c0_69 = arith.constant 0 : index
    %c0_70 = arith.constant 0 : index
    %125 = vector.load %arg6[%c0_68, %c0_69, %c0_70] : memref<1x8x2xf32, #tpu.memory_space<vmem>>, vector<1x8x2xf32>
    %126 = vector.shape_cast %125 : vector<1x8x2xf32> to vector<8x2xf32>
    %127 = vector.shape_cast %124 : vector<8x2xf32> to vector<1x8x2xf32>
    tpu.vector_store %arg6[%c0_68, %c0_69, %c0_70], %127 {strides = array<i32>} : memref<1x8x2xf32, #tpu.memory_space<vmem>>, vector<1x8x2xf32>,
    return
  }
  func.func @transform_0(%arg0: i32) -> (i32, i32, i32) {
    %c0_i32 = arith.constant 0 : i32
    %c0_i32_0 = arith.constant 0 : i32
    %c0_i32_1 = arith.constant 0 : i32
    return %arg0, %c0_i32, %c0_i32_0 : i32, i32, i32
  }
  func.func @transform_1(%arg0: i32) -> (i32, i32) {
    %c0_i32 = arith.constant 0 : i32
    %c0_i32_0 = arith.constant 0 : i32
    %c0_i32_1 = arith.constant 0 : i32
    return %c0_i32, %c0_i32_0 : i32, i32
  }
  func.func @transform_2(%arg0: i32) -> (i32, i32, i32) {
    %c0_i32 = arith.constant 0 : i32
    %c0_i32_0 = arith.constant 0 : i32
    %c0_i32_1 = arith.constant 0 : i32
    %c0_i32_2 = arith.constant 0 : i32
    return %c0_i32, %c0_i32_0, %c0_i32_1 : i32, i32, i32
  }
  func.func @transform_3(%arg0: i32) -> (i32, i32, i32) {
    %c0_i32 = arith.constant 0 : i32
    %c0_i32_0 = arith.constant 0 : i32
    %c0_i32_1 = arith.constant 0 : i32
    %c0_i32_2 = arith.constant 0 : i32
    return %c0_i32, %c0_i32_0, %c0_i32_1 : i32, i32, i32
  }
  func.func @transform_4(%arg0: i32) -> (i32, i32, i32, i32) {
    %c0_i32 = arith.constant 0 : i32
    %c0_i32_0 = arith.constant 0 : i32
    %c0_i32_1 = arith.constant 0 : i32
    %c0_i32_2 = arith.constant 0 : i32
    return %arg0, %c0_i32, %c0_i32_0, %c0_i32_1 : i32, i32, i32, i32
  }
  func.func @transform_5(%arg0: i32) -> (i32, i32, i32) {
    %c0_i32 = arith.constant 0 : i32
    %c0_i32_0 = arith.constant 0 : i32
    %c0_i32_1 = arith.constant 0 : i32
    return %arg0, %c0_i32, %c0_i32_0 : i32, i32, i32
  }
}

module attributes {stable_mosaic.version = 11 : i64} {
  func.func @_bn_lrelu_shuffle_add_kernel(%arg0: i32, %arg1: memref<1x4x8x256xbf16, #tpu.memory_space<vmem>>, %arg2: memref<8x2xf32, #tpu.memory_space<vmem>>, %arg3: memref<1x8x256xbf16, #tpu.memory_space<vmem>>, %arg4: memref<8x2xf32, #tpu.memory_space<vmem>>, %arg5: memref<1x4x8x256xf32, #tpu.memory_space<vmem>>) attributes {dimension_semantics = [#tpu.dimension_semantics<parallel>], iteration_bounds = array<i64: 2>, scalar_prefetch = 0 : i64, scratch_operands = 0 : i64, tpu.core_type = #tpu.core_type<tc>, window_params = [{transform_indices = @transform_0, window_bounds = array<i64: 1, 4, 8, 256>}, {pipeline_mode = #tpu.pipeline_mode<synchronous>, transform_indices = @transform_1, window_bounds = array<i64: 8, 2>}, {transform_indices = @transform_2, window_bounds = array<i64: 1, 8, 256>}, {pipeline_mode = #tpu.pipeline_mode<synchronous>, transform_indices = @transform_3, window_bounds = array<i64: 8, 2>}, {transform_indices = @transform_4, window_bounds = array<i64: 1, 4, 8, 256>}]} {
    %c0 = arith.constant 0 : index
    %c0_0 = arith.constant 0 : index
    %c0_1 = arith.constant 0 : index
    %0 = vector.load %arg3[%c0, %c0_0, %c0_1] : memref<1x8x256xbf16, #tpu.memory_space<vmem>>, vector<1x8x256xbf16>
    %1 = vector.shape_cast %0 : vector<1x8x256xbf16> to vector<8x256xbf16>
    %2 = arith.extf %1 : vector<8x256xbf16> to vector<8x256xf32>
    %c0_2 = arith.constant 0 : index
    %c0_3 = arith.constant 0 : index
    %3 = vector.load %arg4[%c0_2, %c0_3] : memref<8x2xf32, #tpu.memory_space<vmem>>, vector<8x1xf32>
    %4 = vector.broadcast %3 : vector<8x1xf32> to vector<8x256xf32>
    %5 = arith.mulf %2, %4 : vector<8x256xf32>
    %c0_4 = arith.constant 0 : index
    %c1 = arith.constant 1 : index
    %6 = vector.load %arg4[%c0_4, %c1] : memref<8x2xf32, #tpu.memory_space<vmem>>, vector<8x1xf32>
    %7 = vector.broadcast %6 : vector<8x1xf32> to vector<8x256xf32>
    %8 = arith.addf %5, %7 : vector<8x256xf32>
    %cst = arith.constant 0.000000e+00 : f32
    %9 = vector.broadcast %cst : f32 to vector<8x256xf32>
    %10 = arith.cmpf oge, %8, %9 : vector<8x256xf32>
    %cst_5 = arith.constant 2.000000e-01 : f32
    %11 = vector.broadcast %cst_5 : f32 to vector<8x256xf32>
    %12 = arith.mulf %11, %8 : vector<8x256xf32>
    %13 = arith.select %10, %8, %12 : vector<8x256xi1>, vector<8x256xf32>
    %cst_6 = arith.constant 0.000000e+00 : f32
    %14 = vector.broadcast %cst_6 : f32 to vector<8x256xf32>
    %15 = arith.cmpf oge, %13, %14 : vector<8x256xf32>
    %cst_7 = arith.constant 2.000000e-01 : f32
    %16 = vector.broadcast %cst_7 : f32 to vector<8x256xf32>
    %17 = arith.mulf %16, %13 : vector<8x256xf32>
    %18 = arith.select %15, %13, %17 : vector<8x256xi1>, vector<8x256xf32>
    %c0_8 = arith.constant 0 : index
    %c0_9 = arith.constant 0 : index
    %c0_10 = arith.constant 0 : index
    %c0_11 = arith.constant 0 : index
    %19 = vector.load %arg1[%c0_8, %c0_9, %c0_10, %c0_11] : memref<1x4x8x256xbf16, #tpu.memory_space<vmem>>, vector<1x1x8x256xbf16>
    %20 = vector.shape_cast %19 : vector<1x1x8x256xbf16> to vector<8x256xbf16>
    %21 = arith.extf %20 : vector<8x256xbf16> to vector<8x256xf32>
    %c0_12 = arith.constant 0 : index
    %c0_13 = arith.constant 0 : index
    %22 = vector.load %arg2[%c0_12, %c0_13] : memref<8x2xf32, #tpu.memory_space<vmem>>, vector<8x1xf32>
    %23 = vector.broadcast %22 : vector<8x1xf32> to vector<8x256xf32>
    %24 = arith.mulf %21, %23 : vector<8x256xf32>
    %c0_14 = arith.constant 0 : index
    %c1_15 = arith.constant 1 : index
    %25 = vector.load %arg2[%c0_14, %c1_15] : memref<8x2xf32, #tpu.memory_space<vmem>>, vector<8x1xf32>
    %26 = vector.broadcast %25 : vector<8x1xf32> to vector<8x256xf32>
    %27 = arith.addf %24, %26 : vector<8x256xf32>
    %cst_16 = arith.constant 0.000000e+00 : f32
    %28 = vector.broadcast %cst_16 : f32 to vector<8x256xf32>
    %29 = arith.cmpf oge, %27, %28 : vector<8x256xf32>
    %cst_17 = arith.constant 2.000000e-01 : f32
    %30 = vector.broadcast %cst_17 : f32 to vector<8x256xf32>
    %31 = arith.mulf %30, %27 : vector<8x256xf32>
    %32 = arith.select %29, %27, %31 : vector<8x256xi1>, vector<8x256xf32>
    %33 = arith.addf %32, %18 : vector<8x256xf32>
    %c0_18 = arith.constant 0 : index
    %c0_19 = arith.constant 0 : index
    %c0_20 = arith.constant 0 : index
    %c0_21 = arith.constant 0 : index
    %34 = vector.load %arg5[%c0_18, %c0_19, %c0_20, %c0_21] : memref<1x4x8x256xf32, #tpu.memory_space<vmem>>, vector<1x1x8x256xf32>
    %35 = vector.shape_cast %34 : vector<1x1x8x256xf32> to vector<8x256xf32>
    %36 = vector.shape_cast %33 : vector<8x256xf32> to vector<1x1x8x256xf32>
    tpu.vector_store %arg5[%c0_18, %c0_19, %c0_20, %c0_21], %36 {strides = array<i32>} : memref<1x4x8x256xf32, #tpu.memory_space<vmem>>, vector<1x1x8x256xf32>,
    %c0_22 = arith.constant 0 : index
    %c1_23 = arith.constant 1 : index
    %c0_24 = arith.constant 0 : index
    %c0_25 = arith.constant 0 : index
    %37 = vector.load %arg1[%c0_22, %c1_23, %c0_24, %c0_25] : memref<1x4x8x256xbf16, #tpu.memory_space<vmem>>, vector<1x1x8x256xbf16>
    %38 = vector.shape_cast %37 : vector<1x1x8x256xbf16> to vector<8x256xbf16>
    %39 = arith.extf %38 : vector<8x256xbf16> to vector<8x256xf32>
    %c0_26 = arith.constant 0 : index
    %c0_27 = arith.constant 0 : index
    %40 = vector.load %arg2[%c0_26, %c0_27] : memref<8x2xf32, #tpu.memory_space<vmem>>, vector<8x1xf32>
    %41 = vector.broadcast %40 : vector<8x1xf32> to vector<8x256xf32>
    %42 = arith.mulf %39, %41 : vector<8x256xf32>
    %c0_28 = arith.constant 0 : index
    %c1_29 = arith.constant 1 : index
    %43 = vector.load %arg2[%c0_28, %c1_29] : memref<8x2xf32, #tpu.memory_space<vmem>>, vector<8x1xf32>
    %44 = vector.broadcast %43 : vector<8x1xf32> to vector<8x256xf32>
    %45 = arith.addf %42, %44 : vector<8x256xf32>
    %cst_30 = arith.constant 0.000000e+00 : f32
    %46 = vector.broadcast %cst_30 : f32 to vector<8x256xf32>
    %47 = arith.cmpf oge, %45, %46 : vector<8x256xf32>
    %cst_31 = arith.constant 2.000000e-01 : f32
    %48 = vector.broadcast %cst_31 : f32 to vector<8x256xf32>
    %49 = arith.mulf %48, %45 : vector<8x256xf32>
    %50 = arith.select %47, %45, %49 : vector<8x256xi1>, vector<8x256xf32>
    %51 = arith.addf %50, %18 : vector<8x256xf32>
    %c0_32 = arith.constant 0 : index
    %c1_33 = arith.constant 1 : index
    %c0_34 = arith.constant 0 : index
    %c0_35 = arith.constant 0 : index
    %52 = vector.load %arg5[%c0_32, %c1_33, %c0_34, %c0_35] : memref<1x4x8x256xf32, #tpu.memory_space<vmem>>, vector<1x1x8x256xf32>
    %53 = vector.shape_cast %52 : vector<1x1x8x256xf32> to vector<8x256xf32>
    %54 = vector.shape_cast %51 : vector<8x256xf32> to vector<1x1x8x256xf32>
    tpu.vector_store %arg5[%c0_32, %c1_33, %c0_34, %c0_35], %54 {strides = array<i32>} : memref<1x4x8x256xf32, #tpu.memory_space<vmem>>, vector<1x1x8x256xf32>,
    %c0_36 = arith.constant 0 : index
    %c2 = arith.constant 2 : index
    %c0_37 = arith.constant 0 : index
    %c0_38 = arith.constant 0 : index
    %55 = vector.load %arg1[%c0_36, %c2, %c0_37, %c0_38] : memref<1x4x8x256xbf16, #tpu.memory_space<vmem>>, vector<1x1x8x256xbf16>
    %56 = vector.shape_cast %55 : vector<1x1x8x256xbf16> to vector<8x256xbf16>
    %57 = arith.extf %56 : vector<8x256xbf16> to vector<8x256xf32>
    %c0_39 = arith.constant 0 : index
    %c0_40 = arith.constant 0 : index
    %58 = vector.load %arg2[%c0_39, %c0_40] : memref<8x2xf32, #tpu.memory_space<vmem>>, vector<8x1xf32>
    %59 = vector.broadcast %58 : vector<8x1xf32> to vector<8x256xf32>
    %60 = arith.mulf %57, %59 : vector<8x256xf32>
    %c0_41 = arith.constant 0 : index
    %c1_42 = arith.constant 1 : index
    %61 = vector.load %arg2[%c0_41, %c1_42] : memref<8x2xf32, #tpu.memory_space<vmem>>, vector<8x1xf32>
    %62 = vector.broadcast %61 : vector<8x1xf32> to vector<8x256xf32>
    %63 = arith.addf %60, %62 : vector<8x256xf32>
    %cst_43 = arith.constant 0.000000e+00 : f32
    %64 = vector.broadcast %cst_43 : f32 to vector<8x256xf32>
    %65 = arith.cmpf oge, %63, %64 : vector<8x256xf32>
    %cst_44 = arith.constant 2.000000e-01 : f32
    %66 = vector.broadcast %cst_44 : f32 to vector<8x256xf32>
    %67 = arith.mulf %66, %63 : vector<8x256xf32>
    %68 = arith.select %65, %63, %67 : vector<8x256xi1>, vector<8x256xf32>
    %69 = arith.addf %68, %18 : vector<8x256xf32>
    %c0_45 = arith.constant 0 : index
    %c2_46 = arith.constant 2 : index
    %c0_47 = arith.constant 0 : index
    %c0_48 = arith.constant 0 : index
    %70 = vector.load %arg5[%c0_45, %c2_46, %c0_47, %c0_48] : memref<1x4x8x256xf32, #tpu.memory_space<vmem>>, vector<1x1x8x256xf32>
    %71 = vector.shape_cast %70 : vector<1x1x8x256xf32> to vector<8x256xf32>
    %72 = vector.shape_cast %69 : vector<8x256xf32> to vector<1x1x8x256xf32>
    tpu.vector_store %arg5[%c0_45, %c2_46, %c0_47, %c0_48], %72 {strides = array<i32>} : memref<1x4x8x256xf32, #tpu.memory_space<vmem>>, vector<1x1x8x256xf32>,
    %c0_49 = arith.constant 0 : index
    %c3 = arith.constant 3 : index
    %c0_50 = arith.constant 0 : index
    %c0_51 = arith.constant 0 : index
    %73 = vector.load %arg1[%c0_49, %c3, %c0_50, %c0_51] : memref<1x4x8x256xbf16, #tpu.memory_space<vmem>>, vector<1x1x8x256xbf16>
    %74 = vector.shape_cast %73 : vector<1x1x8x256xbf16> to vector<8x256xbf16>
    %75 = arith.extf %74 : vector<8x256xbf16> to vector<8x256xf32>
    %c0_52 = arith.constant 0 : index
    %c0_53 = arith.constant 0 : index
    %76 = vector.load %arg2[%c0_52, %c0_53] : memref<8x2xf32, #tpu.memory_space<vmem>>, vector<8x1xf32>
    %77 = vector.broadcast %76 : vector<8x1xf32> to vector<8x256xf32>
    %78 = arith.mulf %75, %77 : vector<8x256xf32>
    %c0_54 = arith.constant 0 : index
    %c1_55 = arith.constant 1 : index
    %79 = vector.load %arg2[%c0_54, %c1_55] : memref<8x2xf32, #tpu.memory_space<vmem>>, vector<8x1xf32>
    %80 = vector.broadcast %79 : vector<8x1xf32> to vector<8x256xf32>
    %81 = arith.addf %78, %80 : vector<8x256xf32>
    %cst_56 = arith.constant 0.000000e+00 : f32
    %82 = vector.broadcast %cst_56 : f32 to vector<8x256xf32>
    %83 = arith.cmpf oge, %81, %82 : vector<8x256xf32>
    %cst_57 = arith.constant 2.000000e-01 : f32
    %84 = vector.broadcast %cst_57 : f32 to vector<8x256xf32>
    %85 = arith.mulf %84, %81 : vector<8x256xf32>
    %86 = arith.select %83, %81, %85 : vector<8x256xi1>, vector<8x256xf32>
    %87 = arith.addf %86, %18 : vector<8x256xf32>
    %c0_58 = arith.constant 0 : index
    %c3_59 = arith.constant 3 : index
    %c0_60 = arith.constant 0 : index
    %c0_61 = arith.constant 0 : index
    %88 = vector.load %arg5[%c0_58, %c3_59, %c0_60, %c0_61] : memref<1x4x8x256xf32, #tpu.memory_space<vmem>>, vector<1x1x8x256xf32>
    %89 = vector.shape_cast %88 : vector<1x1x8x256xf32> to vector<8x256xf32>
    %90 = vector.shape_cast %87 : vector<8x256xf32> to vector<1x1x8x256xf32>
    tpu.vector_store %arg5[%c0_58, %c3_59, %c0_60, %c0_61], %90 {strides = array<i32>} : memref<1x4x8x256xf32, #tpu.memory_space<vmem>>, vector<1x1x8x256xf32>,
    return
  }
  func.func @transform_0(%arg0: i32) -> (i32, i32, i32, i32) {
    %c0_i32 = arith.constant 0 : i32
    %c0_i32_0 = arith.constant 0 : i32
    %c0_i32_1 = arith.constant 0 : i32
    %c0_i32_2 = arith.constant 0 : i32
    return %arg0, %c0_i32, %c0_i32_0, %c0_i32_1 : i32, i32, i32, i32
  }
  func.func @transform_1(%arg0: i32) -> (i32, i32) {
    %c0_i32 = arith.constant 0 : i32
    %c0_i32_0 = arith.constant 0 : i32
    %c0_i32_1 = arith.constant 0 : i32
    return %c0_i32, %c0_i32_0 : i32, i32
  }
  func.func @transform_2(%arg0: i32) -> (i32, i32, i32) {
    %c0_i32 = arith.constant 0 : i32
    %c0_i32_0 = arith.constant 0 : i32
    %c0_i32_1 = arith.constant 0 : i32
    return %arg0, %c0_i32, %c0_i32_0 : i32, i32, i32
  }
  func.func @transform_3(%arg0: i32) -> (i32, i32) {
    %c0_i32 = arith.constant 0 : i32
    %c0_i32_0 = arith.constant 0 : i32
    %c0_i32_1 = arith.constant 0 : i32
    return %c0_i32, %c0_i32_0 : i32, i32
  }
  func.func @transform_4(%arg0: i32) -> (i32, i32, i32, i32) {
    %c0_i32 = arith.constant 0 : i32
    %c0_i32_0 = arith.constant 0 : i32
    %c0_i32_1 = arith.constant 0 : i32
    %c0_i32_2 = arith.constant 0 : i32
    return %arg0, %c0_i32, %c0_i32_0, %c0_i32_1 : i32, i32, i32, i32
  }
}

</mosaic_0001>

<bundles_post_ra>
// kernel: resblock_up_forward.3
= control target key start
LH: loop header
LB: loop body
LE: loop exit
PB: predicated region body
PF: predicated region fallthrough
CT: control target
= control target key end

     0   :  { %s913_s24 = smov 0   ;;  %s1040_s0 = inlined_call_operand.vmem [shape: f32[2,8,256], index: 0, kind: input, shape index: {}]   ;;  %s1041_s1 = inlined_call_operand.vmem [shape: f32[9,1,256], index: 1, kind: input, shape index: {}]   ;;  %s1042_s2 = inlined_call_operand.vmem [shape: bf16[8,72], index: 2, kind: input, shape index: {}]   ;;  %s1043_s3 = inlined_call_operand.vmem [shape: bf16[8,72], index: 3, kind: input, shape index: {}]   ;;  %s1044_s4 = inlined_call_operand.vmem [shape: bf16[2,8,256], index: 4, kind: output, shape index: {0}]   ;;  %s1045_s5 = inlined_call_operand.vmem [shape: bf16[2,8,256], index: 5, kind: output, shape index: {1}]   ;;  %s1046_s6 = inlined_call_operand.vmem [shape: f32[2,8,2], index: 6, kind: output, shape index: {2}]   ;;  %s1047_s7 = inlined_call_operand.vmem [shape: f32[2,8,2], index: 7, kind: output, shape index: {3}]  }
   0x1 LB: > { %s805_s25 = sadd.s32 4294967295, %s862_s24   ;;  %p809_p0 = scmp.ge.s32.totalorder %s862_s24, 1  ;;  %s862_s24 = sphi %s913_s24, %s18_s24  }
   0x2   : > { %p244_p1 = scmp.lt.s32.totalorder %s862_s24, 3 }
   0x4   : > { %p245_p2 = pnand %p809_p0, %p244_p1 }
   0x5   : > { %p289_p3 = scmp.lt.s32.totalorder (!%p245_p2), %s805_s25, 1  ;;  %s864_s30 = smov (!%p245_p2), 16   ;;  %v870_v2 = vmov (!%p245_p2), 0   ;;  %v319_v3 = vlaneseq (!%p245_p2)  ;;  %v818_v8 = vld [vmem:[%s1041_s1 + $0x2] sm:$0x3] (!%p245_p2)  ;;  %vm522_vm8 = vcmask (!%p245_p2), 1043456  }
   0x6   : > { %248 = sbr.rel (%p245_p2) target bundleno = 536 (0x218), region = 36  ;;  %s865_s8 = smov (!%p245_p2), 17   ;;  %561 = vmatprep.mubr.bf16.mxu0 (!%p245_p2), %v870_v2  ;;  %606 = vmatprep.mubr.bf16.mxu1 (!%p245_p2), %v870_v2  ;;  %v324_v9 = vld [vmem:[%s1041_s1] sm:$0x3] (!%p245_p2)  ;;  %v819_v26 = vld [vmem:[%s1041_s1 + $0x4] sm:$0x3] (!%p245_p2) }
   0x7   : > { %s866_s9 = smov (!%p245_p2), 15   ;;  %s867_s10 = smov (!%p245_p2), 1   ;;  %v327_v4 = vshrl.u32 (!%p245_p2), %v319_v3, 7  ;;  %v947_v5 = vand.u32 (!%p245_p2), 127, %v319_v3  ;;  %v820_v27 = vld [vmem:[%s1041_s1 + $0x6] sm:$0x3] (!%p245_p2) }
   0x8   : > { %s868_s11 = smov (!%p245_p2), 127   ;;  %s869_s12 = smov (!%p245_p2), 113   ;;  %v821_v33 = vld [vmem:[%s1041_s1 + $0x8] sm:$0x3] (!%p245_p2)  ;;  %v822_v37 = vld [vmem:[%s1041_s1 + $0xa] sm:$0x3] (!%p245_p2) }
   0x9   : > { %s871_s13 = smov (!%p245_p2), 112   ;;  %s872_s14 = smov (!%p245_p2), 111   ;;  %v949_v6 = vsub.s32 (!%p245_p2), 0, %v327_v4  ;;  %v951_v7 = vsub.s32 (!%p245_p2), 1, %v327_v4  ;;  %vm342_vm0 = vcmp.lt.s32.totalorder (!%p245_p2), %v947_v5, 16  ;;  %vm321_vm1 = vcmp.lt.s32.totalorder (!%p245_p2), %v947_v5, 17 }
   0xa   : > { %vm364_vm2 = vcmp.lt.s32.totalorder (!%p245_p2), %v947_v5, 15  ;;  %vm386_vm3 = vcmp.lt.s32.totalorder (!%p245_p2), %v947_v5, 1  ;;  %vm423_vm4 = vcmp.lt.s32.totalorder (!%p245_p2), %v947_v5, 127  ;;  %v823_v62 = vld [vmem:[%s1041_s1 + $0xc] sm:$0x3] (!%p245_p2)  ;;  %vm445_vm5 = vcmp.lt.s32.totalorder (!%p245_p2), %v947_v5, 113 }
   0xb   : > { %v351_v12 = vrot.slane (!%p245_p2), %v818_v8, %v949_v6  ;;  %v355_v13 = vrot.slane (!%p245_p2), %v818_v8, %v951_v7  ;;  %v329_v14 = vrot.slane (!%p245_p2), %v324_v9, %v949_v6  ;;  %v333_v15 = vrot.slane (!%p245_p2), %v324_v9, %v951_v7  ;;  %v824_v63 = vld [vmem:[%s1041_s1 + $0xe] sm:$0x3] (!%p245_p2) }
   0xc   : > { %v373_v32 = vrot.slane (!%p245_p2), %v819_v26, %v949_v6  ;;  %v377_v34 = vrot.slane (!%p245_p2), %v819_v26, %v951_v7  ;;  %v395_v35 = vrot.slane (!%p245_p2), %v820_v27, %v949_v6  ;;  %v399_v36 = vrot.slane (!%p245_p2), %v820_v27, %v951_v7 }
   0xd   : > { %s1049_s25 = smov (!%p289_p3, %s805_s25), 1  ;;  %v414_v42 = vrot.slane %v821_v33, %v951_v7  ;;  %v410_v43 = vrot.slane %v821_v33, %v949_v6  ;;  %v432_v46 = vrot.slane %v822_v37, %v949_v6  ;;  %v436_v47 = vrot.slane %v822_v37, %v951_v7  ;;  %v570_v33 = vld [vmem:[%s1043_s3] sm:$0xf] }
   0xe   : > { %s834_s26 = sshll.u32 %s1049_s25, 4  ;;  %v454_v4 = vrot.slane %v823_v62, %v949_v6  ;;  %v458_v8 = vrot.slane %v823_v62, %v951_v7  ;;  %vm467_vm6 = vcmp.lt.s32.totalorder %v947_v5, 112  ;;  %v476_v9 = vrot.slane %v824_v63, %v949_v6  ;;  %s1019_s16 = sshll.u32 %s1049_s25, 3 }
   0xf   : > { %s293_s29 = scalar_lea.vmem %s1040_s0, %s834_s26  ;;  %vm489_vm7 = vcmp.lt.s32.totalorder %v947_v5, 111  ;;  %vm518_vm9 = vcmask 588800   ;;  %s298_s19 = scalar_lea.vmem %s1044_s4, %s1019_s16  ;;  %vm641_vm10 = vcmask 7168   ;;  %vm643_vm11 = vcmask 15360  }
  0x10   : > { %v927_v0 = vld [vmem:[%s293_s29] sm:$0xff]  ;;  %v931_v1 = vld [vmem:[%s293_s29 + $0x8] sm:$0xff]  ;;  %s303_s22 = scalar_lea.vmem %s1045_s5, %s1019_s16  ;;  %s307_s26 = scalar_lea.vmem %s1046_s6, %s1019_s16 }
  0x11   : > { %338 = vrot.lane.b32.xlu1 %v927_v0, %s864_s30  ;;  %315 = vrot.lane.b32.xlu0 %v927_v0, %s865_s8  ;;  %v418_v56 = vmul.f32 %v414_v42, %v931_v1  ;;  %v417_v57 = vmul.f32 %v410_v43, %v927_v0  ;;  %s311_s29 = scalar_lea.vmem %s1047_s7, %s1019_s16 }
  0x15   : > { %340 = vrot.lane.b32.xlu1 %v931_v1, %s864_s30  ;;  %317 = vrot.lane.b32.xlu0 %v931_v1, %s865_s8 }
  0x19   : > { %362 = vrot.lane.b32.xlu1 %v931_v1, %s866_s9  ;;  %360 = vrot.lane.b32.xlu0 %v927_v0, %s866_s9 }
  0x1d   : > { %384 = vrot.lane.b32.xlu1 %v931_v1, %s867_s10  ;;  %382 = vrot.lane.b32.xlu0 %v927_v0, %s867_s10 }
  0x21   : > { %421 = vrot.lane.b32.xlu1 %v931_v1, %s868_s11  ;;  %419 = vrot.lane.b32.xlu0 %v927_v0, %s868_s11 }
  0x25   : > { %443 = vrot.lane.b32.xlu1 %v931_v1, %s869_s12  ;;  %441 = vrot.lane.b32.xlu0 %v927_v0, %s869_s12 }
  0x29   : > { %465 = vrot.lane.b32.xlu1 %v931_v1, %s871_s13  ;;  %463 = vrot.lane.b32.xlu0 %v927_v0, %s871_s13 }
  0x2d   : > { %487 = vrot.lane.b32.xlu1 %v931_v1, %s872_s14  ;;  %485 = vrot.lane.b32.xlu0 %v927_v0, %s872_s14 }
  0x83   : > { %v339_v10 = vpop.permute.xlu1 %338  ;;  %v316_v11 = vpop.permute.xlu0 %315 }
  0x87   : > { %v341_v16 = vpop.permute.xlu1 %340  ;;  %v318_v17 = vpop.permute.xlu0 %317 }
  0x88   : > { %v343_v18 = vsel %vm342_vm0, %v339_v10, %v341_v16  ;;  %v344_v19 = vsel %vm342_vm0, %v341_v16, %v339_v10  ;;  %v322_v20 = vsel %vm321_vm1, %v316_v11, %v318_v17  ;;  %v323_v21 = vsel %vm321_vm1, %v318_v17, %v316_v11  ;;  %v825_v11 = vld [vmem:[%s1041_s1 + $0x10] sm:$0x3] }
  0x89   : > { %v358_v22 = vmul.f32 %v351_v12, %v344_v19  ;;  %v359_v23 = vmul.f32 %v355_v13, %v343_v18  ;;  %v336_v24 = vmul.f32 %v329_v14, %v323_v21  ;;  %v337_v25 = vmul.f32 %v333_v15, %v322_v20 }
  0x8a   : > { %v480_v10 = vrot.slane %v824_v63, %v951_v7  ;;  %v498_v18 = vrot.slane %v825_v11, %v949_v6  ;;  %v502_v19 = vrot.slane %v825_v11, %v951_v7 }
  0x8b   : > { %v363_v28 = vpop.permute.xlu1 %362  ;;  %v361_v29 = vpop.permute.xlu0 %360  ;;  %v508_v30 = vpack.c.bf16 %v359_v23, %v337_v25  ;;  %v507_v31 = vpack.c.bf16 %v358_v22, %v336_v24 }
  0x8c   : > { %v365_v38 = vsel %vm364_vm2, %v361_v29, %v363_v28  ;;  %v366_v39 = vsel %vm364_vm2, %v363_v28, %v361_v29 }
  0x8d   : > { %529 = vmatprep.subr.bf16.mxu0 %v508_v30  ;;  %574 = vmatprep.subr.bf16.mxu1 %v508_v30  ;;  %v380_v48 = vmul.f32 %v373_v32, %v366_v39  ;;  %v381_v49 = vmul.f32 %v377_v34, %v365_v38  ;;  %v517_v32 = vld [vmem:[%s1042_s2] sm:$0xf] }
  0x8e   : > { %530 = vmatpush1.bf16.msra.mxu0 %v507_v31  ;;  %575 = vmatpush1.bf16.msra.mxu1 %v507_v31 }
  0x8f   : > { %v385_v40 = vpop.permute.xlu1 %384  ;;  %v383_v41 = vpop.permute.xlu0 %382 }
  0x90   : > { %v387_v44 = vsel %vm386_vm3, %v383_v41, %v385_v40  ;;  %v388_v45 = vsel %vm386_vm3, %v385_v40, %v383_v41 }
  0x91   : > { %v402_v50 = vmul.f32 %v395_v35, %v388_v45  ;;  %v403_v51 = vmul.f32 %v399_v36, %v387_v44 }
  0x93   : > { %v422_v52 = vpop.permute.xlu1 %421  ;;  %v420_v53 = vpop.permute.xlu0 %419  ;;  %v510_v54 = vpack.c.bf16 %v403_v51, %v381_v49  ;;  %v509_v55 = vpack.c.bf16 %v402_v50, %v380_v48 }
  0x94   : > { %v424_v58 = vsel %vm423_vm4, %v420_v53, %v422_v52  ;;  %v425_v59 = vsel %vm423_vm4, %v422_v52, %v420_v53 }
  0x95   : > { %v439_v60 = vmul.f32 %v432_v46, %v424_v58  ;;  %v440_v61 = vmul.f32 %v436_v47, %v425_v59  ;;  %531 = vmatprep.subr.bf16.mxu0 %v510_v54  ;;  %576 = vmatprep.subr.bf16.mxu1 %v510_v54 }
  0x96   : > { %532 = vmatpush1.bf16.msra.mxu0 %v509_v55  ;;  %577 = vmatpush1.bf16.msra.mxu1 %v509_v55 }
  0x97   : > { %v444_v0 = vpop.permute.xlu1 %443  ;;  %v442_v1 = vpop.permute.xlu0 %441  ;;  %v512_v2 = vpack.c.bf16 %v440_v61, %v418_v56  ;;  %v511_v3 = vpack.c.bf16 %v439_v60, %v417_v57 }
  0x98   : > { %v446_v12 = vsel %vm445_vm5, %v442_v1, %v444_v0  ;;  %v447_v13 = vsel %vm445_vm5, %v444_v0, %v442_v1 }
  0x99   : > { %533 = vmatprep.subr.bf16.mxu0 %v512_v2  ;;  %578 = vmatprep.subr.bf16.mxu1 %v512_v2  ;;  %v461_v20 = vmul.f32 %v454_v4, %v446_v12  ;;  %v462_v21 = vmul.f32 %v458_v8, %v447_v13 }
  0x9a   : > { %534 = vmatpush1.bf16.msra.mxu0 %v511_v3  ;;  %579 = vmatpush1.bf16.msra.mxu1 %v511_v3 }
  0x9b   : > { %v466_v14 = vpop.permute.xlu1 %465  ;;  %v464_v15 = vpop.permute.xlu0 %463 }
  0x9c   : > { %v468_v16 = vsel %vm467_vm6, %v464_v15, %v466_v14  ;;  %v469_v17 = vsel %vm467_vm6, %v466_v14, %v464_v15 }
  0x9d   : > { %v483_v22 = vmul.f32 %v476_v9, %v468_v16  ;;  %v484_v23 = vmul.f32 %v480_v10, %v469_v17 }
  0x9f   : > { %v488_v24 = vpop.permute.xlu1 %487  ;;  %v486_v25 = vpop.permute.xlu0 %485  ;;  %v514_v26 = vpack.c.bf16 %v484_v23, %v462_v21  ;;  %v513_v27 = vpack.c.bf16 %v483_v22, %v461_v20 }
  0xa0   : > { %v490_v28 = vsel %vm489_vm7, %v486_v25, %v488_v24  ;;  %v491_v29 = vsel %vm489_vm7, %v488_v24, %v486_v25 }
  0xa1   : > { %v505_v30 = vmul.f32 %v498_v18, %v490_v28  ;;  %v506_v31 = vmul.f32 %v502_v19, %v491_v29  ;;  %535 = vmatprep.subr.bf16.mxu0 %v514_v26  ;;  %580 = vmatprep.subr.bf16.mxu1 %v514_v26 }
  0xa2   : > { %536 = vmatpush1.bf16.msra.mxu0 %v513_v27  ;;  %581 = vmatpush1.bf16.msra.mxu1 %v513_v27 }
  0xa3   : > { %v515_v5 = vpack.c.bf16 %v505_v30, %v505_v30  ;;  %v516_v6 = vpack.c.bf16 %v506_v31, %v506_v31 }
  0xa5   : > { %826 = vmatprep.subr.msk.bf16.mxu0 %vm522_vm8, %v516_v6  ;;  %828 = vmatprep.subr.msk.bf16.mxu1 %vm522_vm8, %v516_v6  ;;  %v524_v7 = vsel %vm522_vm8, %v515_v5, 0 }
  0xa6   : > { %538 = vmatpush1.bf16.msra.mxu0 %v524_v7  ;;  %583 = vmatpush1.bf16.msra.mxu1 %v524_v7 }
  0xa9   : > { %827 = vmatmul.mubr.msk.bf16.vlgmr.msra.gmra.mrb[0].mxu0 %vm518_vm9, %v517_v32  ;;  %829 = vmatmul.mubr.msk.bf16.vlgmr.msra.gmra.mrb[0].mxu1 %vm518_vm9, %v570_v33 }
 0x17c   : > { %v563_v34 = vpop.f32.mrb[0].mxu0  ;;  %v608_v35 = vpop.f32.mrb[0].mxu1 }
 0x17d   : > { %v565_v36 = vpop.f32.mrb[1].mxu0  ;;  %v610_v37 = vpop.f32.mrb[1].mxu1  ;;  %v636_v38 = vmul.f32 %v563_v34, %v563_v34  ;;  %v648_v39 = vmul.f32 %v608_v35, %v608_v35 }
 0x17e   : > { %v837_v40 = vpack.c.bf16 %v565_v36, %v563_v34  ;;  %v567_v41 = vpop.f32.mrb[2].mxu0  ;;  %v838_v42 = vpack.c.bf16 %v610_v37, %v608_v35  ;;  %v612_v43 = vpop.f32.mrb[2].mxu1  ;;  %v633_v44 = vadd.f32 %v565_v36, %v563_v34  ;;  %v637_v45 = vmul.f32 %v565_v36, %v565_v36 }
 0x17f   : > { %v568_v46 = vpop.f32.mrb[3].mxu0  ;;  %v613_v47 = vpop.f32.mrb[3].mxu1  ;;  %v645_v48 = vadd.f32 %v610_v37, %v608_v35  ;;  %v649_v49 = vmul.f32 %v610_v37, %v610_v37 }
 0x180   : > { %623 = vst [vmem:[%s298_s19] sm:$0xff] %v837_v40  ;;  %632 = vst [vmem:[%s303_s22] sm:$0xff] %v838_v42  ;;  %634 = vadd.xlane.f32.xlu0 %v633_v44  ;;  %v638_v50 = vadd.f32 %v637_v45, %v636_v38 }
 0x181   : > { %v650_v51 = vadd.f32 %v649_v49, %v648_v39 }
 0x182   : > { %639 = vadd.xlane.f32.xlu1 %v638_v50 }
 0x184   : > { %646 = vadd.xlane.f32.xlu0 %v645_v48 }
 0x188   : > { %651 = vadd.xlane.f32.xlu0 %v650_v51 }
 0x20d   : > { %v635_v52 = vpop.xlane.xlu0 %634 }
 0x20f   : > { %v640_v53 = vpop.xlane.xlu1 %639 }
 0x210   : > { %v642_v54 = vsel %vm641_vm10, %v635_v52, %v640_v53 }
 0x211   : > { %644 = vst.msk [vmem:[%s307_s26] sm:$0xff] %vm643_vm11, %v642_v54  ;;  %v647_v55 = vpop.xlane.xlu0 %646 }
 0x215   : > { %v652_v56 = vpop.xlane.xlu0 %651 }
 0x216   : > { %v653_v57 = vsel %vm641_vm10, %v647_v55, %v652_v56 }
 0x217   : > { %654 = vst.msk [vmem:[%s311_s29] sm:$0xff] %vm643_vm11, %v653_v57 }
 0x218 PF: > { %s18_s24 = sadd.s32 1, %s862_s24  }
 0x219   : > { %p15_p4 = scmp.ge.s32.totalorder %s18_s24, 4  }
 0x21b   :  { %17 = sbr.rel (!%p15_p4) target bundleno = 1 (0x1), region = 110 }

// kernel: resblock_up_forward.4
= control target key start
LH: loop header
LB: loop body
LE: loop exit
PB: predicated region body
PF: predicated region fallthrough
CT: control target
= control target key end

     0   :  { %s925_s18 = smov 0   ;;  %s1072_s0 = inlined_call_operand.vmem [shape: bf16[2,8,256], index: 0, kind: input, shape index: {}]   ;;  %s1073_s1 = inlined_call_operand.vmem [shape: f32[8,2], index: 1, kind: input, shape index: {}]   ;;  %s1074_s2 = inlined_call_operand.vmem [shape: f32[9,1,256], index: 2, kind: input, shape index: {}]   ;;  %s1075_s3 = inlined_call_operand.vmem [shape: bf16[4,8,32], index: 3, kind: input, shape index: {}]   ;;  %s1076_s4 = inlined_call_operand.vmem [shape: bf16[2,4,8,256], index: 4, kind: output, shape index: {0}]   ;;  %s1077_s5 = inlined_call_operand.vmem [shape: f32[2,8,2], index: 5, kind: output, shape index: {1}]  }
   0x1 LB: > { %s817_s19 = sadd.s32 4294967295, %s883_s18   ;;  %p821_p0 = scmp.ge.s32.totalorder %s883_s18, 1  ;;  %s883_s18 = sphi %s925_s18, %s16_s18  }
   0x2   : > { %p190_p1 = scmp.lt.s32.totalorder %s883_s18, 3 }
   0x4   : > { %p191_p2 = pnand %p821_p0, %p190_p1 }
   0x5   : > { %v240_v0 = vld [vmem:[%s1073_s1] sm:$0xff] (!%p191_p2)  ;;  %v885_v1 = vmov (!%p191_p2), 0   ;;  %v886_v2 = vmov (!%p191_p2), 1   ;;  %p222_p3 = scmp.lt.s32.totalorder (!%p191_p2), %s817_s19, 1  ;;  %s887_s26 = smov (!%p191_p2), 16   ;;  %v264_v16 = vlaneseq (!%p191_p2)  ;;  %vm457_vm7 = vcmask (!%p191_p2), 261120  }
   0x6   : > { %194 = sbr.rel (%p191_p2) target bundleno = 664 (0x298), region = 36  ;;  %875 = vset.pattern.permute.xlu0 (!%p191_p2), %v885_v1  ;;  %493 = vmatprep.mubr.bf16.mxu0 (!%p191_p2), %v885_v1  ;;  %s888_s27 = smov (!%p191_p2), 17   ;;  %v269_v21 = vld [vmem:[%s1074_s2] sm:$0x3] (!%p191_p2)  ;;  %v827_v23 = vld [vmem:[%s1074_s2 + $0x2] sm:$0x3] (!%p191_p2) }
   0x7   : > { %243 = vperm.xlu0 (!%p191_p2), %875, %v240_v0   ;;  %562 = vmatprep.mubr.bf16.mxu1 (!%p191_p2), %v885_v1  ;;  %s889_s28 = smov (!%p191_p2), 15   ;;  %s890_s29 = smov (!%p191_p2), 1   ;;  %v272_v17 = vshrl.u32 (!%p191_p2), %v264_v16, 7  ;;  %v967_v20 = vand.u32 (!%p191_p2), 127, %v264_v16  ;;  %v828_v29 = vld [vmem:[%s1074_s2 + $0x4] sm:$0x3] (!%p191_p2) }
   0x8   : > { %s891_s30 = smov (!%p191_p2), 127   ;;  %s892_s6 = smov (!%p191_p2), 113   ;;  %v830_v40 = vld [vmem:[%s1074_s2 + $0x8] sm:$0x3] (!%p191_p2)  ;;  %v829_v45 = vld [vmem:[%s1074_s2 + $0x6] sm:$0x3] (!%p191_p2) }
   0x9   : > { %s893_s7 = smov (!%p191_p2), 112   ;;  %s894_s8 = smov (!%p191_p2), 111   ;;  %v972_v22 = vsub.s32 (!%p191_p2), 0, %v272_v17  ;;  %vm266_vm2 = vcmp.lt.s32.totalorder (!%p191_p2), %v967_v20, 17  ;;  %v978_v25 = vsub.s32 (!%p191_p2), 1, %v272_v17  ;;  %vm287_vm3 = vcmp.lt.s32.totalorder (!%p191_p2), %v967_v20, 16 }
   0xa   : > { %vm309_vm4 = vcmp.lt.s32.totalorder (!%p191_p2), %v967_v20, 15  ;;  %vm331_vm5 = vcmp.lt.s32.totalorder (!%p191_p2), %v967_v20, 1  ;;  %v831_v58 = vld [vmem:[%s1074_s2 + $0xa] sm:$0x3] (!%p191_p2)  ;;  %vm368_vm6 = vcmp.lt.s32.totalorder (!%p191_p2), %v967_v20, 127  ;;  %vm390_vm8 = vcmp.lt.s32.totalorder (!%p191_p2), %v967_v20, 113 }
   0xb   : > { %876 = vset.pattern.permute.xlu0 (!%p191_p2), %v886_v2  ;;  %v274_v27 = vrot.slane (!%p191_p2), %v269_v21, %v972_v22  ;;  %v296_v28 = vrot.slane (!%p191_p2), %v827_v23, %v972_v22  ;;  %v278_v30 = vrot.slane (!%p191_p2), %v269_v21, %v978_v25  ;;  %v300_v31 = vrot.slane (!%p191_p2), %v827_v23, %v978_v25  ;;  %v456_v16 = vld [vmem:[%s1075_s3] sm:$0xf] (!%p191_p2)  ;;  %v833_v17 = vld [vmem:[%s1074_s2 + $0xe] sm:$0x3] (!%p191_p2) }
   0xc   : > { %249 = vperm.xlu0 (!%p191_p2), %876, %v240_v0   ;;  %v318_v38 = vrot.slane (!%p191_p2), %v828_v29, %v972_v22  ;;  %v322_v39 = vrot.slane (!%p191_p2), %v828_v29, %v978_v25  ;;  %v359_v49 = vrot.slane (!%p191_p2), %v830_v40, %v978_v25  ;;  %v355_v52 = vrot.slane (!%p191_p2), %v830_v40, %v972_v22  ;;  %v834_v29 = vld [vmem:[%s1074_s2 + $0x10] sm:$0x3] (!%p191_p2) }
   0xd   : > { %s1079_s19 = smov (!%p222_p3, %s817_s19), 1  ;;  %v340_v55 = vrot.slane %v829_v45, %v972_v22  ;;  %v344_v56 = vrot.slane %v829_v45, %v978_v25  ;;  %vm412_vm9 = vcmp.lt.s32.totalorder %v967_v20, 112  ;;  %vm434_vm10 = vcmp.lt.s32.totalorder %v967_v20, 111 }
   0xe   : > { %s851_s22 = sshll.u32 %s1079_s19, 3  ;;  %s852_s13 = sshll.u32 %s1079_s19, 5  ;;  %vm727_vm11 = vcmask 7168   ;;  %vm729_vm12 = vcmask 15360  }
   0xf   : > { %s226_s25 = scalar_lea.vmem %s1072_s0, %s851_s22  ;;  %s1058_s16 = scalar_lea.vmem %s1076_s4, %s852_s13 }
  0x10   : > { %v237_v3 = vld [vmem:[%s226_s25] sm:$0xff]  ;;  %s235_s21 = scalar_lea.vmem %s1077_s5, %s851_s22 }
  0x11   : > { %v238_v5 = vunpack.c.l.bf16 %v237_v3  ;;  %v239_v6 = vunpack.c.h.bf16 %v237_v3 }
  0x86   : > { %v244_v4 = vpop.permute.xlu0 %243 }
  0x87   : > { %v246_v7 = vmul.f32 %v244_v4, %v238_v5  ;;  %v247_v8 = vmul.f32 %v244_v4, %v239_v6  ;;  %v377_v5 = vrot.slane %v831_v58, %v972_v22  ;;  %v381_v6 = vrot.slane %v831_v58, %v978_v25 }
  0x8b   : > { %v250_v9 = vpop.permute.xlu0 %249 }
  0x8c   : > { %v252_v10 = vadd.f32 %v250_v9, %v246_v7  ;;  %v253_v11 = vadd.f32 %v250_v9, %v247_v8 }
  0x8e   : > { %vm254_vm0 = vcmp.ge.f32.partialorder %v252_v10, 0.0  ;;  %vm255_vm1 = vcmp.ge.f32.partialorder %v253_v11, 0.0  ;;  %v256_v12 = vmul.f32 0.2, %v252_v10  ;;  %v257_v13 = vmul.f32 0.2, %v253_v11 }
  0x90   : > { %v947_v14 = vsel %vm254_vm0, %v252_v10, %v256_v12  ;;  %v949_v15 = vsel %vm255_vm1, %v253_v11, %v257_v13 }
  0x91   : > { %285 = vrot.lane.b32.xlu0 %v949_v15, %s887_s26  ;;  %260 = vrot.lane.b32.xlu1 %v947_v14, %s888_s27  ;;  %v363_v62 = vmul.f32 %v359_v49, %v949_v15  ;;  %v362_v2 = vmul.f32 %v355_v52, %v947_v14 }
  0x95   : > { %307 = vrot.lane.b32.xlu0 %v949_v15, %s889_s28  ;;  %262 = vrot.lane.b32.xlu1 %v949_v15, %s888_s27 }
  0x99   : > { %329 = vrot.lane.b32.xlu0 %v949_v15, %s890_s29  ;;  %283 = vrot.lane.b32.xlu1 %v947_v14, %s887_s26 }
  0x9d   : > { %366 = vrot.lane.b32.xlu0 %v949_v15, %s891_s30  ;;  %305 = vrot.lane.b32.xlu1 %v947_v14, %s889_s28 }
  0xa1   : > { %388 = vrot.lane.b32.xlu0 %v949_v15, %s892_s6  ;;  %327 = vrot.lane.b32.xlu1 %v947_v14, %s890_s29 }
  0xa5   : > { %410 = vrot.lane.b32.xlu0 %v949_v15, %s893_s7  ;;  %364 = vrot.lane.b32.xlu1 %v947_v14, %s891_s30 }
  0xa9   : > { %432 = vrot.lane.b32.xlu0 %v949_v15, %s894_s8  ;;  %386 = vrot.lane.b32.xlu1 %v947_v14, %s892_s6 }
  0xad   : > { %408 = vrot.lane.b32.xlu1 %v947_v14, %s893_s7 }
  0xb1   : > { %430 = vrot.lane.b32.xlu1 %v947_v14, %s894_s8  ;;  %v832_v14 = vld [vmem:[%s1074_s2 + $0xc] sm:$0x3] }
  0xb2   : > { %v399_v23 = vrot.slane %v832_v14, %v972_v22 }
 0x103   : > { %v286_v18 = vpop.permute.xlu0 %285  ;;  %v261_v19 = vpop.permute.xlu1 %260 }
 0x107   : > { %v308_v24 = vpop.permute.xlu0 %307  ;;  %v263_v26 = vpop.permute.xlu1 %262 }
 0x108   : > { %v267_v32 = vsel %vm266_vm2, %v261_v19, %v263_v26  ;;  %v268_v33 = vsel %vm266_vm2, %v263_v26, %v261_v19  ;;  %v403_v26 = vrot.slane %v832_v14, %v978_v25 }
 0x109   : > { %v281_v41 = vmul.f32 %v274_v27, %v268_v33  ;;  %v282_v43 = vmul.f32 %v278_v30, %v267_v32  ;;  %v421_v27 = vrot.slane %v833_v17, %v972_v22  ;;  %v837_v32 = vld [vmem:[%s1075_s3 + $0x4] sm:$0xf] }
 0x10b   : > { %v330_v34 = vpop.permute.xlu0 %329  ;;  %v284_v35 = vpop.permute.xlu1 %283 }
 0x10c   : > { %v288_v36 = vsel %vm287_vm3, %v284_v35, %v286_v18  ;;  %v289_v37 = vsel %vm287_vm3, %v286_v18, %v284_v35 }
 0x10d   : > { %v303_v42 = vmul.f32 %v296_v28, %v289_v37  ;;  %v304_v44 = vmul.f32 %v300_v31, %v288_v36  ;;  %v425_v28 = vrot.slane %v833_v17, %v978_v25  ;;  %v443_v36 = vrot.slane %v834_v29, %v972_v22 }
 0x10e   : > { %v447_v37 = vrot.slane %v834_v29, %v978_v25 }
 0x10f   : > { %v306_v46 = vpop.permute.xlu1 %305  ;;  %v453_v47 = vpack.c.bf16 %v304_v44, %v282_v43  ;;  %v452_v48 = vpack.c.bf16 %v303_v42, %v281_v41  ;;  %v367_v53 = vpop.permute.xlu0 %366 }
 0x110   : > { %v310_v50 = vsel %vm309_vm4, %v306_v46, %v308_v24  ;;  %v311_v51 = vsel %vm309_vm4, %v308_v24, %v306_v46 }
 0x111   : > { %v325_v54 = vmul.f32 %v318_v38, %v311_v51  ;;  %461 = vmatprep.subr.bf16.mxu0 %v453_v47  ;;  %v326_v57 = vmul.f32 %v322_v39, %v310_v50  ;;  %v845_v50 = vld [vmem:[%s1075_s3 + $0xc] sm:$0xf] }
 0x112   : > { %462 = vmatpush1.bf16.msra.mxu0 %v452_v48  ;;  %v841_v48 = vld [vmem:[%s1075_s3 + $0x8] sm:$0xf] }
 0x113   : > { %v328_v59 = vpop.permute.xlu1 %327  ;;  %v522_v60 = vpack.c.bf16 %v326_v57, %v304_v44  ;;  %v521_v61 = vpack.c.bf16 %v325_v54, %v303_v42  ;;  %v389_v7 = vpop.permute.xlu0 %388 }
 0x114   : > { %v332_v63 = vsel %vm331_vm5, %v328_v59, %v330_v34  ;;  %v333_v0 = vsel %vm331_vm5, %v330_v34, %v328_v59 }
 0x115   : > { %v347_v3 = vmul.f32 %v340_v55, %v333_v0  ;;  %v348_v4 = vmul.f32 %v344_v56, %v332_v63  ;;  %530 = vmatprep.subr.bf16.mxu1 %v522_v60 }
 0x116   : > { %531 = vmatpush1.bf16.msra.mxu1 %v521_v61 }
 0x117   : > { %v365_v8 = vpop.permute.xlu1 %364  ;;  %v455_v9 = vpack.c.bf16 %v363_v62, %v348_v4  ;;  %v454_v10 = vpack.c.bf16 %v362_v2, %v347_v3  ;;  %v411_v24 = vpop.permute.xlu0 %410 }
 0x118   : > { %v369_v11 = vsel %vm368_vm6, %v365_v8, %v367_v53  ;;  %v370_v12 = vsel %vm368_vm6, %v367_v53, %v365_v8 }
 0x119   : > { %v384_v13 = vmul.f32 %v377_v5, %v369_v11  ;;  %v385_v15 = vmul.f32 %v381_v6, %v370_v12  ;;  %463 = vmatprep.subr.bf16.mxu0 %v455_v9 }
 0x11a   : > { %464 = vmatpush1.bf16.msra.mxu0 %v454_v10 }
 0x11b   : > { %v387_v18 = vpop.permute.xlu1 %386  ;;  %598 = vmatprep.subr.bf16.mxu0 %v455_v9  ;;  %v524_v19 = vpack.c.bf16 %v385_v15, %v363_v62  ;;  %v523_v21 = vpack.c.bf16 %v384_v13, %v362_v2  ;;  %v433_v42 = vpop.permute.xlu0 %432 }
 0x11c   : > { %v391_v30 = vsel %vm390_vm8, %v387_v18, %v389_v7  ;;  %v392_v31 = vsel %vm390_vm8, %v389_v7, %v387_v18 }
 0x11d   : > { %532 = vmatprep.subr.bf16.mxu1 %v524_v19  ;;  %835 = vmatmul.mubr.msk.bf16.vlgmr.msra.gmra.mrb[0].mxu0 %vm457_vm7, %v456_v16  ;;  %v406_v38 = vmul.f32 %v399_v23, %v391_v30  ;;  %v407_v39 = vmul.f32 %v403_v26, %v392_v31 }
 0x11e   : > { %533 = vmatpush1.bf16.msra.mxu1 %v523_v21  ;;  %599 = vmatpush1.bf16.msra.mxu0 %v454_v10 }
 0x11f   : > { %v409_v33 = vpop.permute.xlu1 %408  ;;  %666 = vmatprep.subr.bf16.mxu1 %v524_v19  ;;  %630 = vmatprep.mubr.bf16.mxu0 %v885_v1 }
 0x120   : > { %v413_v34 = vsel %vm412_vm9, %v409_v33, %v411_v24  ;;  %v414_v35 = vsel %vm412_vm9, %v411_v24, %v409_v33 }
 0x121   : > { %v428_v40 = vmul.f32 %v421_v27, %v413_v34  ;;  %v429_v41 = vmul.f32 %v425_v28, %v414_v35  ;;  %838 = vmatmul.mubr.msk.bf16.vlgmr.msra.gmra.mrb[0].mxu1 %vm457_vm7, %v837_v32 }
 0x122   : > { %667 = vmatpush1.bf16.msra.mxu1 %v523_v21  ;;  %698 = vmatprep.mubr.bf16.mxu1 %v885_v1 }
 0x123   : > { %v591_v43 = vpack.c.bf16 %v428_v40, %v406_v38  ;;  %v431_v44 = vpop.permute.xlu1 %430  ;;  %v592_v45 = vpack.c.bf16 %v429_v41, %v407_v39 }
 0x124   : > { %v435_v46 = vsel %vm434_vm10, %v431_v44, %v433_v42  ;;  %v436_v22 = vsel %vm434_vm10, %v433_v42, %v431_v44 }
 0x125   : > { %v450_v25 = vmul.f32 %v443_v36, %v435_v46  ;;  %v451_v47 = vmul.f32 %v447_v37, %v436_v22  ;;  %600 = vmatprep.subr.bf16.mxu0 %v592_v45 }
 0x126   : > { %601 = vmatpush1.bf16.msra.mxu0 %v591_v43 }
 0x127   : > { %v659_v1 = vpack.c.bf16 %v450_v25, %v428_v40  ;;  %v660_v49 = vpack.c.bf16 %v451_v47, %v429_v41 }
 0x129   : > { %842 = vmatmul.mubr.msk.bf16.vlgmr.msra.gmra.mrb[4].mxu0 %vm457_vm7, %v841_v48  ;;  %668 = vmatprep.subr.bf16.mxu1 %v660_v49 }
 0x12a   : > { %669 = vmatpush1.bf16.msra.mxu1 %v659_v1 }
 0x12d   : > { %846 = vmatmul.mubr.msk.bf16.vlgmr.msra.gmra.mrb[4].mxu1 %vm457_vm7, %v845_v50 }
 0x1f0   : > { %v495_v20 = vpop.f32.mrb[0].mxu0 }
 0x1f1   : > { %v497_v51 = vpop.f32.mrb[1].mxu0  ;;  %v515_v52 = vmul.f32 %v495_v20, %v495_v20 }
 0x1f2   : > { %v853_v53 = vpack.c.bf16 %v497_v51, %v495_v20  ;;  %v499_v54 = vpop.f32.mrb[2].mxu0  ;;  %v511_v55 = vadd.f32 %v497_v51, %v495_v20  ;;  %v516_v56 = vmul.f32 %v497_v51, %v497_v51 }
 0x1f3   : > { %v500_v57 = vpop.f32.mrb[3].mxu0 }
 0x1f4   : > { %510 = vst [vmem:[%s1058_s16] sm:$0xff] %v853_v53  ;;  %v564_v58 = vpop.f32.mrb[0].mxu1  ;;  %512 = vadd.xlane.f32.xlu1 %v511_v55  ;;  %v517_v59 = vadd.f32 %v516_v56, %v515_v52 }
 0x1f5   : > { %v566_v60 = vpop.f32.mrb[1].mxu1  ;;  %v585_v61 = vmul.f32 %v564_v58, %v564_v58 }
 0x1f6   : > { %v854_v62 = vpack.c.bf16 %v566_v60, %v564_v58  ;;  %v568_v63 = vpop.f32.mrb[2].mxu1  ;;  %v581_v0 = vadd.f32 %v566_v60, %v564_v58  ;;  %v586_v2 = vmul.f32 %v566_v60, %v566_v60 }
 0x1f7   : > { %v569_v3 = vpop.f32.mrb[3].mxu1 }
 0x1f8   : > { %840 = vst [vmem:[%s1058_s16 + $0x8] sm:$0xff] %v854_v62  ;;  %582 = vadd.xlane.f32.xlu0 %v581_v0  ;;  %v587_v4 = vadd.f32 %v586_v2, %v585_v61 }
 0x1fa   : > { %588 = vadd.xlane.f32.xlu1 %v587_v4 }
 0x1fc   : > { %518 = vadd.xlane.f32.xlu0 %v517_v59  ;;  %v632_v5 = vpop.f32.mrb[4].mxu0 }
 0x1fd   : > { %v634_v6 = vpop.f32.mrb[5].mxu0  ;;  %v653_v7 = vmul.f32 %v632_v5, %v632_v5 }
 0x1fe   : > { %v855_v8 = vpack.c.bf16 %v634_v6, %v632_v5  ;;  %v636_v9 = vpop.f32.mrb[6].mxu0  ;;  %v649_v10 = vadd.f32 %v634_v6, %v632_v5  ;;  %v654_v11 = vmul.f32 %v634_v6, %v634_v6 }
 0x1ff   : > { %v637_v12 = vpop.f32.mrb[7].mxu0 }
 0x200   : > { %844 = vst [vmem:[%s1058_s16 + $0x10] sm:$0xff] %v855_v8  ;;  %v700_v13 = vpop.f32.mrb[4].mxu1  ;;  %650 = vadd.xlane.f32.xlu0 %v649_v10  ;;  %v655_v15 = vadd.f32 %v654_v11, %v653_v7 }
 0x201   : > { %v702_v14 = vpop.f32.mrb[5].mxu1  ;;  %v721_v16 = vmul.f32 %v700_v13, %v700_v13 }
 0x202   : > { %v856_v17 = vpack.c.bf16 %v702_v14, %v700_v13  ;;  %v704_v18 = vpop.f32.mrb[6].mxu1  ;;  %656 = vadd.xlane.f32.xlu1 %v655_v15  ;;  %v717_v19 = vadd.f32 %v702_v14, %v700_v13  ;;  %v722_v21 = vmul.f32 %v702_v14, %v702_v14 }
 0x203   : > { %v705_v23 = vpop.f32.mrb[7].mxu1 }
 0x204   : > { %848 = vst [vmem:[%s1058_s16 + $0x18] sm:$0xff] %v856_v17  ;;  %718 = vadd.xlane.f32.xlu0 %v717_v19  ;;  %v723_v24 = vadd.f32 %v722_v21, %v721_v16 }
 0x206   : > { %724 = vadd.xlane.f32.xlu1 %v723_v24 }
 0x281   : > { %v513_v27 = vpop.xlane.xlu1 %512 }
 0x285   : > { %v583_v26 = vpop.xlane.xlu0 %582 }
 0x286   : > { %v584_v32 = vadd.f32 %v583_v26, %v513_v27 }
 0x287   : > { %v589_v29 = vpop.xlane.xlu1 %588 }
 0x289   : > { %v519_v28 = vpop.xlane.xlu0 %518 }
 0x28a   : > { %v590_v33 = vadd.f32 %v589_v29, %v519_v28 }
 0x28d   : > { %v651_v30 = vpop.xlane.xlu0 %650 }
 0x28e   : > { %v652_v35 = vadd.f32 %v651_v30, %v584_v32 }
 0x28f   : > { %v657_v31 = vpop.xlane.xlu1 %656 }
 0x290   : > { %v658_v36 = vadd.f32 %v657_v31, %v590_v33 }
 0x291   : > { %v719_v34 = vpop.xlane.xlu0 %718 }
 0x292   : > { %v720_v38 = vadd.f32 %v719_v34, %v652_v35 }
 0x293   : > { %v725_v37 = vpop.xlane.xlu1 %724 }
 0x294   : > { %v726_v39 = vadd.f32 %v725_v37, %v658_v36 }
 0x296   : > { %v728_v40 = vsel %vm727_vm11, %v720_v38, %v726_v39 }
 0x297   : > { %730 = vst.msk [vmem:[%s235_s21] sm:$0xff] %vm729_vm12, %v728_v40 }
 0x298 PF: > { %s16_s18 = sadd.s32 1, %s883_s18  }
 0x299   : > { %p13_p4 = scmp.ge.s32.totalorder %s16_s18, 4  }
 0x29b   :  { %15 = sbr.rel (!%p13_p4) target bundleno = 1 (0x1), region = 92 }

// kernel: resblock_up_forward.5
= control target key start
LH: loop header
LB: loop body
LE: loop exit
PB: predicated region body
PF: predicated region fallthrough
CT: control target
= control target key end

     0   :  { %s502_s15 = smov 0   ;;  %s543_s0 = inlined_call_operand.vmem [shape: bf16[2,4,8,256], index: 0, kind: input, shape index: {}]   ;;  %s544_s1 = inlined_call_operand.vmem [shape: f32[8,2], index: 1, kind: input, shape index: {}]   ;;  %s545_s2 = inlined_call_operand.vmem [shape: bf16[2,8,256], index: 2, kind: input, shape index: {}]   ;;  %s546_s3 = inlined_call_operand.vmem [shape: f32[8,2], index: 3, kind: input, shape index: {}]   ;;  %s547_s4 = inlined_call_operand.vmem [shape: f32[2,4,8,256], index: 4, kind: output, shape index: {}]  }
   0x1 LB: > { %s428_s16 = sadd.s32 4294967295, %s473_s15   ;;  %p432_p0 = scmp.ge.s32.totalorder %s473_s15, 1  ;;  %s473_s15 = sphi %s502_s15, %s14_s15  }
   0x2   : > { %p172_p1 = scmp.lt.s32.totalorder %s473_s15, 3 }
   0x4   : > { %p173_p2 = pnand %p432_p0, %p172_p1 }
   0x5   : > { %v250_v0 = vld [vmem:[%s544_s1] sm:$0xff] (!%p173_p2)  ;;  %v475_v2 = vmov (!%p173_p2), 0   ;;  %v476_v3 = vmov (!%p173_p2), 1   ;;  %p203_p3 = scmp.lt.s32.totalorder (!%p173_p2), %s428_s16, 1 }
   0x6   : > { %176 = sbr.rel (%p173_p2) target bundleno = 165 (0xa5), region = 36  ;;  %v221_v1 = vld [vmem:[%s546_s3] sm:$0xff] (!%p173_p2)  ;;  %464 = vset.pattern.permute.xlu1 (!%p173_p2), %v475_v2  ;;  %463 = vset.pattern.permute.xlu0 (!%p173_p2), %v475_v2 }
   0x7   : > { %253 = vperm.xlu1 (!%p173_p2), %464, %v250_v0   ;;  %224 = vperm.xlu0 (!%p173_p2), %463, %v221_v1  }
   0xb   : > { %281 = vperm.xlu1 (!%p173_p2), %464, %v250_v0   ;;  %339 = vperm.xlu0 (!%p173_p2), %463, %v250_v0  }
   0xd   : > { %s549_s16 = smov (!%p203_p3, %s428_s16), 1 }
   0xe   : > { %s451_s21 = sshll.u32 %s549_s16, 3  ;;  %s450_s25 = sshll.u32 %s549_s16, 5 }
   0xf   : > { %310 = vperm.xlu1 %464, %v250_v0   ;;  %465 = vset.pattern.permute.xlu0 %v476_v3  ;;  %s212_s24 = scalar_lea.vmem %s545_s2, %s451_s21  ;;  %s207_s28 = scalar_lea.vmem %s543_s0, %s450_s25 }
  0x10   : > { %230 = vperm.xlu0 %465, %v221_v1   ;;  %v218_v4 = vld [vmem:[%s212_s24] sm:$0xff]  ;;  %v439_v11 = vld [vmem:[%s207_s28 + $0x8] sm:$0xff]  ;;  %v445_v15 = vld [vmem:[%s207_s28 + $0x18] sm:$0xff]  ;;  %s452_s29 = sshll.u32 %s549_s16, 6 }
  0x11   : > { %v219_v7 = vunpack.c.l.bf16 %v218_v4  ;;  %v220_v8 = vunpack.c.h.bf16 %v218_v4  ;;  %v247_v9 = vld [vmem:[%s207_s28] sm:$0xff]  ;;  %v442_v16 = vld [vmem:[%s207_s28 + $0x10] sm:$0xff]  ;;  %v276_v19 = vunpack.c.l.bf16 %v439_v11  ;;  %v277_v20 = vunpack.c.h.bf16 %v439_v11  ;;  %s530_s6 = scalar_lea.vmem %s547_s4, %s452_s29 }
  0x12   : > { %v248_v17 = vunpack.c.l.bf16 %v247_v9  ;;  %v249_v18 = vunpack.c.h.bf16 %v247_v9  ;;  %v334_v22 = vunpack.c.l.bf16 %v445_v15  ;;  %v335_v23 = vunpack.c.h.bf16 %v445_v15 }
  0x13   : > { %466 = vset.pattern.permute.xlu1 %v476_v3  ;;  %v305_v24 = vunpack.c.l.bf16 %v442_v16  ;;  %v306_v25 = vunpack.c.h.bf16 %v442_v16 }
  0x14   : > { %259 = vperm.xlu1 %466, %v250_v0   ;;  %316 = vperm.xlu0 %465, %v250_v0  }
  0x18   : > { %287 = vperm.xlu1 %466, %v250_v0  }
  0x1c   : > { %345 = vperm.xlu1 %466, %v250_v0  }
  0x86   : > { %v254_v5 = vpop.permute.xlu1 %253  ;;  %v225_v6 = vpop.permute.xlu0 %224 }
  0x87   : > { %v227_v13 = vmul.f32 %v225_v6, %v219_v7  ;;  %v228_v14 = vmul.f32 %v225_v6, %v220_v8  ;;  %v256_v29 = vmul.f32 %v254_v5, %v248_v17  ;;  %v257_v30 = vmul.f32 %v254_v5, %v249_v18 }
  0x8a   : > { %v282_v10 = vpop.permute.xlu1 %281  ;;  %v340_v12 = vpop.permute.xlu0 %339 }
  0x8b   : > { %v284_v31 = vmul.f32 %v282_v10, %v276_v19  ;;  %v285_v32 = vmul.f32 %v282_v10, %v277_v20  ;;  %v342_v35 = vmul.f32 %v340_v12, %v334_v22  ;;  %v343_v36 = vmul.f32 %v340_v12, %v335_v23 }
  0x8e   : > { %v311_v21 = vpop.permute.xlu1 %310 }
  0x8f   : > { %v231_v26 = vpop.permute.xlu0 %230  ;;  %v313_v37 = vmul.f32 %v311_v21, %v305_v24  ;;  %v314_v38 = vmul.f32 %v311_v21, %v306_v25 }
  0x90   : > { %v233_v27 = vadd.f32 %v231_v26, %v227_v13  ;;  %v234_v28 = vadd.f32 %v231_v26, %v228_v14 }
  0x92   : > { %vm235_vm0 = vcmp.ge.f32.partialorder %v233_v27, 0.0  ;;  %vm236_vm1 = vcmp.ge.f32.partialorder %v234_v28, 0.0  ;;  %v237_v33 = vmul.f32 0.2, %v233_v27  ;;  %v238_v34 = vmul.f32 0.2, %v234_v28 }
  0x93   : > { %v260_v39 = vpop.permute.xlu1 %259  ;;  %v317_v44 = vpop.permute.xlu0 %316 }
  0x94   : > { %v239_v40 = vsel %vm235_vm0, %v233_v27, %v237_v33  ;;  %v240_v41 = vsel %vm236_vm1, %v234_v28, %v238_v34  ;;  %v262_v42 = vadd.f32 %v260_v39, %v256_v29  ;;  %v263_v43 = vadd.f32 %v260_v39, %v257_v30 }
  0x95   : > { %vm241_vm2 = vcmp.ge.f32.partialorder %v239_v40, 0.0  ;;  %vm242_vm3 = vcmp.ge.f32.partialorder %v240_v41, 0.0  ;;  %v243_v45 = vmul.f32 0.2, %v239_v40  ;;  %v244_v46 = vmul.f32 0.2, %v240_v41 }
  0x96   : > { %vm264_vm4 = vcmp.ge.f32.partialorder %v262_v42, 0.0  ;;  %vm265_vm5 = vcmp.ge.f32.partialorder %v263_v43, 0.0  ;;  %v266_v47 = vmul.f32 0.2, %v262_v42  ;;  %v267_v48 = vmul.f32 0.2, %v263_v43 }
  0x97   : > { %v245_v49 = vsel %vm241_vm2, %v239_v40, %v243_v45  ;;  %v246_v50 = vsel %vm242_vm3, %v240_v41, %v244_v46  ;;  %v319_v51 = vadd.f32 %v317_v44, %v313_v37  ;;  %v320_v52 = vadd.f32 %v317_v44, %v314_v38  ;;  %v288_v53 = vpop.permute.xlu1 %287 }
  0x98   : > { %v268_v54 = vsel %vm264_vm4, %v262_v42, %v266_v47  ;;  %v269_v55 = vsel %vm265_vm5, %v263_v43, %v267_v48  ;;  %v290_v56 = vadd.f32 %v288_v53, %v284_v31  ;;  %v291_v57 = vadd.f32 %v288_v53, %v285_v32 }
  0x99   : > { %v270_v58 = vadd.f32 %v268_v54, %v245_v49  ;;  %v271_v59 = vadd.f32 %v269_v55, %v246_v50  ;;  %vm321_vm6 = vcmp.ge.f32.partialorder %v319_v51, 0.0  ;;  %vm322_vm7 = vcmp.ge.f32.partialorder %v320_v52, 0.0 }
  0x9a   : > { %v323_v60 = vmul.f32 0.2, %v319_v51  ;;  %v324_v61 = vmul.f32 0.2, %v320_v52  ;;  %vm292_vm8 = vcmp.ge.f32.partialorder %v290_v56, 0.0  ;;  %vm293_vm9 = vcmp.ge.f32.partialorder %v291_v57, 0.0 }
  0x9b   : > { %272 = vst [vmem:[%s530_s6] sm:$0xff] %v270_v58  ;;  %273 = vst [vmem:[%s530_s6 + $0x8] sm:$0xff] %v271_v59  ;;  %v294_v62 = vmul.f32 0.2, %v290_v56  ;;  %v295_v63 = vmul.f32 0.2, %v291_v57  ;;  %v346_v0 = vpop.permute.xlu1 %345 }
  0x9c   : > { %v325_v1 = vsel %vm321_vm6, %v319_v51, %v323_v60  ;;  %v326_v2 = vsel %vm322_vm7, %v320_v52, %v324_v61  ;;  %v348_v3 = vadd.f32 %v346_v0, %v342_v35  ;;  %v349_v4 = vadd.f32 %v346_v0, %v343_v36 }
  0x9d   : > { %v327_v5 = vadd.f32 %v325_v1, %v245_v49  ;;  %v328_v6 = vadd.f32 %v326_v2, %v246_v50  ;;  %v296_v7 = vsel %vm292_vm8, %v290_v56, %v294_v62  ;;  %v297_v8 = vsel %vm293_vm9, %v291_v57, %v295_v63 }
  0x9e   : > { %v298_v9 = vadd.f32 %v296_v7, %v245_v49  ;;  %v299_v10 = vadd.f32 %v297_v8, %v246_v50  ;;  %vm350_vm10 = vcmp.ge.f32.partialorder %v348_v3, 0.0  ;;  %vm351_vm11 = vcmp.ge.f32.partialorder %v349_v4, 0.0 }
  0x9f   : > { %443 = vst [vmem:[%s530_s6 + $0x20] sm:$0xff] %v327_v5  ;;  %444 = vst [vmem:[%s530_s6 + $0x28] sm:$0xff] %v328_v6  ;;  %v352_v11 = vmul.f32 0.2, %v348_v3  ;;  %v353_v12 = vmul.f32 0.2, %v349_v4 }
  0xa0   : > { %440 = vst [vmem:[%s530_s6 + $0x10] sm:$0xff] %v298_v9  ;;  %441 = vst [vmem:[%s530_s6 + $0x18] sm:$0xff] %v299_v10 }
  0xa1   : > { %v354_v13 = vsel %vm350_vm10, %v348_v3, %v352_v11  ;;  %v355_v14 = vsel %vm351_vm11, %v349_v4, %v353_v12 }
  0xa2   : > { %v356_v15 = vadd.f32 %v354_v13, %v245_v49  ;;  %v357_v16 = vadd.f32 %v355_v14, %v246_v50 }
  0xa4   : > { %446 = vst [vmem:[%s530_s6 + $0x30] sm:$0xff] %v356_v15  ;;  %447 = vst [vmem:[%s530_s6 + $0x38] sm:$0xff] %v357_v16 }
  0xa5 PF: > { %s14_s15 = sadd.s32 1, %s473_s15  }
  0xa6   : > { %p11_p4 = scmp.ge.s32.totalorder %s14_s15, 4  }
  0xa8   :  { %13 = sbr.rel (!%p11_p4) target bundleno = 1 (0x1), region = 75 }

</bundles_post_ra>
